<compile_context>
chip_gen: v7x
topology: tpu7x:2x2x1
jax: 0.10.0
libtpu: 0.0.40
codegen_flags: <defaults>
</compile_context>

<pallas_src>
import functools

import jax
import jax.numpy as jnp
import numpy as np
from jax import lax
from jax.experimental import pallas as pl
from jax.experimental.pallas import tpu as pltpu


def _routing_kernel(b_ref, e_ref, et_ref, u_ref, o_ref, *, n_iterations, eps):
    # b_ref:  (IC, OC)        shared routing logits
    # e_ref:  (OCD, OC)       segment one-hot (zero rows on padded lanes)
    # et_ref: (OC, OCD)       its transpose
    # u_ref:  (Bt, IC, OCD)   lane-dense predictions (OC*OD flattened, padded)
    # o_ref:  (Bt, OCD)       lane-dense output capsules
    u = u_ref[...].astype(jnp.float32)          # upcast once (bf16 storage supported)
    bt, ic, ocd = u.shape
    b0 = b_ref[...].astype(jnp.float32)         # (IC, OC)
    seg = e_ref[...]                            # (OCD, OC)
    seg_t = et_ref[...]                         # (OC, OCD)
    oc = b0.shape[-1]

    def seg_sum(x):      # (N, OCD) -> (N, OC): sum over output_dim within each capsule (MXU)
        return jnp.dot(x, seg, preferred_element_type=jnp.float32)

    def seg_expand(x):   # (N, OC) -> (N, OCD): broadcast per-capsule scalar over its lanes (MXU)
        return jnp.dot(x, seg_t, preferred_element_type=jnp.float32)

    def softmax_oc(logits):  # softmax over the last (output_caps) axis
        m = jnp.max(logits, axis=-1, keepdims=True)
        e = jnp.exp(logits - m)                                  # EUP
        denom = jnp.sum(e, axis=-1, keepdims=True)
        return e * pl.reciprocal(denom, approx=False)            # EUP (+Newton), exact

    def squash_flat(s_flat):  # (Bt, OCD) -> (Bt, OCD)
        l2 = seg_sum(s_flat * s_flat)                            # (Bt, OC)
        # scale = sqrt(l2)/(1+l2) = l2*rsqrt(l2)/(1+l2)  (rsqrt/reciprocal on EUP)
        scale = l2 * lax.rsqrt(l2 + eps) * pl.reciprocal(1.0 + l2, approx=False)
        return s_flat * seg_expand(scale)

    # --- initial pass with the shared routing logits b ---
    c0 = softmax_oc(b0)                                          # (IC, OC)
    c0_flat = jnp.dot(c0, seg_t, preferred_element_type=jnp.float32)   # (IC, OCD)
    s_flat = jnp.sum(c0_flat[None, :, :] * u, axis=1)            # (Bt, OCD)
    v_flat = squash_flat(s_flat)

    # --- routing iterations (n_iterations is static -> unrolled) ---
    b_batch = jnp.broadcast_to(b0[None, :, :], (bt, ic, oc))     # hoisted, done once
    for _ in range(n_iterations):
        uv = u * v_flat[:, None, :]                              # (Bt, IC, OCD)
        delta = jnp.dot(uv.reshape(bt * ic, ocd), seg,
                        preferred_element_type=jnp.float32).reshape(bt, ic, oc)
        b_batch = b_batch + delta                                # (Bt, IC, OC)
        c = softmax_oc(b_batch)                                  # (Bt, IC, OC)
        c_flat = jnp.dot(c.reshape(bt * ic, oc), seg_t,
                         preferred_element_type=jnp.float32).reshape(bt, ic, ocd)
        s_flat = jnp.sum(c_flat * u, axis=1)                     # (Bt, OCD)
        v_flat = squash_flat(s_flat)

    o_ref[...] = v_flat.astype(o_ref.dtype)


def agreement_routing(u_predict, b, n_iterations, *, eps=1e-30, storage_dtype=None):
    """Pallas implementation of AgreementRouting.forward.

    u_predict: (B, IC, OC, OD); b: (IC, OC). Returns (B, OC, OD).
    """
    B, IC, OC, OD = u_predict.shape
    assert b.shape == (IC, OC)
    ocd = OC * OD
    ocd_pad = max(128, ((ocd + 127) // 128) * 128)   # lane-dense, multiple of 128

    # Lane-dense flattening (+ zero padding of the extra lanes).
    u_flat = u_predict.reshape(B, IC, ocd)
    if ocd_pad != ocd:
        u_flat = jnp.pad(u_flat, ((0, 0), (0, 0), (0, ocd_pad - ocd)))
    if storage_dtype is not None:
        u_flat = u_flat.astype(storage_dtype)        # e.g. bf16 to halve HBM traffic

    # Segment one-hot: E[o*OD + d, o] = 1; padded lanes map to zero rows so they
    # contribute nothing to any reduction.
    seg_np = np.zeros((ocd_pad, OC), dtype=np.float32)
    seg_np[np.arange(ocd), np.arange(ocd) // OD] = 1.0
    seg = jnp.asarray(seg_np)
    seg_t = jnp.asarray(np.ascontiguousarray(seg_np.T))

    # Batch block size: double-buffered input tile + ~3 tile-sized temporaries.
    per_batch = IC * ocd_pad * u_flat.dtype.itemsize
    budget = 40 * 1024 * 1024
    bt = max(1, int(budget // (5 * per_batch)))
    if bt >= B:
        bt = B
    else:
        bt = max(8, (bt // 8) * 8)                   # keep output block sublane-aligned
    b_pad = pl.cdiv(B, bt) * bt
    if b_pad != B:
        u_flat = jnp.pad(u_flat, ((0, b_pad - B), (0, 0), (0, 0)))

    kernel = functools.partial(_routing_kernel, n_iterations=n_iterations, eps=eps)
    out_flat = pl.pallas_call(
        kernel,
        out_shape=jax.ShapeDtypeStruct((b_pad, ocd_pad), jnp.float32),
        grid=(b_pad // bt,),
        in_specs=[
            pl.BlockSpec((IC, OC), lambda i: (0, 0)),          # shared b
            pl.BlockSpec((ocd_pad, OC), lambda i: (0, 0)),     # segment matrix E
            pl.BlockSpec((OC, ocd_pad), lambda i: (0, 0)),     # E^T
            pl.BlockSpec((bt, IC, ocd_pad), lambda i: (i, 0, 0)),
        ],
        out_specs=pl.BlockSpec((bt, ocd_pad), lambda i: (i, 0)),
        compiler_params=pltpu.CompilerParams(
            dimension_semantics=("parallel",),
            vmem_limit_bytes=48 * 1024 * 1024,
        ),
    )(b, seg, seg_t, u_flat)

    v = out_flat[:B, :ocd].reshape(B, OC, OD)
    return v.astype(u_predict.dtype)


def agreement_routing_ref(u_predict, b, n_iterations):
    """Pure-JAX reference mirroring the PyTorch forward exactly."""
    def squash(x):  # x: (B, OC, OD)
        l2 = jnp.sum(x * x, axis=2)
        l = jnp.sqrt(l2)
        return x * (l2 / (1.0 + l2) / l)[:, :, None]

    B, IC, OC, OD = u_predict.shape
    c = jax.nn.softmax(b, axis=1)                                   # (IC, OC)
    s = jnp.sum(c[None, :, :, None] * u_predict, axis=1)            # (B, OC, OD)
    v = squash(s)
    if n_iterations > 0:
        b_batch = jnp.broadcast_to(b, (B, IC, OC))
        for _ in range(n_iterations):
            vv = v[:, None, :, :]                                   # (B,1,OC,OD)
            b_batch = b_batch + jnp.sum(u_predict * vv, axis=-1)    # (B,IC,OC)
            c = jax.nn.softmax(b_batch, axis=-1)[..., None]         # (B,IC,OC,1)
            s = jnp.sum(c * u_predict, axis=1)
            v = squash(s)
    return v


if __name__ == "__main__":
    key = jax.random.PRNGKey(0)

    # Case 1: canonical small CapsNet shapes, OC*OD == 128 (exactly lane-dense),
    # b at its parameter init (zeros), n_iterations=3.
    B, IC, OC, OD = 2, 32, 8, 16
    n_iterations = 3
    k1, k2, k3 = jax.random.split(key, 3)
    u1 = jax.random.normal(k1, (B, IC, OC, OD), dtype=jnp.float32)
    b1 = jnp.zeros((IC, OC), dtype=jnp.float32)
    v1 = jax.block_until_ready(agreement_routing(u1, b1, n_iterations))
    v1_ref = jax.block_until_ready(agreement_routing_ref(u1, b1, n_iterations))
    np.testing.assert_allclose(np.asarray(v1), np.asarray(v1_ref), rtol=1e-4, atol=1e-5)

    # Case 2: OC*OD not a multiple of 128 (exercises lane padding) and non-zero b.
    B2, IC2, OC2, OD2 = 3, 24, 10, 16
    u2 = jax.random.normal(k2, (B2, IC2, OC2, OD2), dtype=jnp.float32)
    b2 = 0.1 * jax.random.normal(k3, (IC2, OC2), dtype=jnp.float32)
    v2 = jax.block_until_ready(agreement_routing(u2, b2, n_iterations))
    v2_ref = jax.block_until_ready(agreement_routing_ref(u2, b2, n_iterations))
    np.testing.assert_allclose(np.asarray(v2), np.asarray(v2_ref), rtol=1e-4, atol=1e-5)

    print("KERNEL_OK")
</pallas_src>

<mosaic_0001>
module attributes {stable_mosaic.version = 11 : i64} {
  func.func @_routing_kernel(%arg0: i32, %arg1: memref<32x8xf32, #tpu.memory_space<vmem>>, %arg2: memref<128x8xf32, #tpu.memory_space<vmem>>, %arg3: memref<8x128xf32, #tpu.memory_space<vmem>>, %arg4: memref<2x32x128xf32, #tpu.memory_space<vmem>>, %arg5: memref<2x128xf32, #tpu.memory_space<vmem>>) attributes {dimension_semantics = [#tpu.dimension_semantics<parallel>], iteration_bounds = array<i64: 1>, scalar_prefetch = 0 : i64, scratch_operands = 0 : i64, tpu.core_type = #tpu.core_type<tc>, window_params = [{pipeline_mode = #tpu.pipeline_mode<synchronous>, transform_indices = @transform_0, window_bounds = array<i64: 32, 8>}, {pipeline_mode = #tpu.pipeline_mode<synchronous>, transform_indices = @transform_1, window_bounds = array<i64: 128, 8>}, {pipeline_mode = #tpu.pipeline_mode<synchronous>, transform_indices = @transform_2, window_bounds = array<i64: 8, 128>}, {transform_indices = @transform_3, window_bounds = array<i64: 2, 32, 128>}, {transform_indices = @transform_4, window_bounds = array<i64: 2, 128>}]} {
    %c0 = arith.constant 0 : index
    %c0_0 = arith.constant 0 : index
    %c0_1 = arith.constant 0 : index
    %0 = vector.load %arg4[%c0, %c0_0, %c0_1] : memref<2x32x128xf32, #tpu.memory_space<vmem>>, vector<2x32x128xf32>
    %c0_2 = arith.constant 0 : index
    %c0_3 = arith.constant 0 : index
    %1 = vector.load %arg1[%c0_2, %c0_3] : memref<32x8xf32, #tpu.memory_space<vmem>>, vector<32x8xf32>
    %c0_4 = arith.constant 0 : index
    %c0_5 = arith.constant 0 : index
    %2 = vector.load %arg2[%c0_4, %c0_5] : memref<128x8xf32, #tpu.memory_space<vmem>>, vector<128x8xf32>
    %c0_6 = arith.constant 0 : index
    %c0_7 = arith.constant 0 : index
    %3 = vector.load %arg3[%c0_6, %c0_7] : memref<8x128xf32, #tpu.memory_space<vmem>>, vector<8x128xf32>
    %cst = arith.constant dense<0xFF800000> : vector<32xf32>
    %4 = vector.multi_reduction <maximumf>, %1, %cst [1] : vector<32x8xf32> to vector<32xf32>
    %5 = vector.shape_cast %4 : vector<32xf32> to vector<32x1xf32>
    %6 = vector.broadcast %5 : vector<32x1xf32> to vector<32x8xf32>
    %7 = arith.subf %1, %6 : vector<32x8xf32>
    %8 = math.exp %7 : vector<32x8xf32>
    %cst_8 = arith.constant dense<0.000000e+00> : vector<32xf32>
    %9 = vector.multi_reduction <add>, %8, %cst_8 [1] : vector<32x8xf32> to vector<32xf32>
    %10 = vector.shape_cast %9 : vector<32xf32> to vector<32x1xf32>
    %11 = tpu.reciprocal %10 : vector<32x1xf32> -> vector<32x1xf32>
    %12 = vector.broadcast %11 : vector<32x1xf32> to vector<32x8xf32>
    %13 = arith.mulf %8, %12 : vector<32x8xf32>
    %cst_9 = arith.constant dense<0.000000e+00> : vector<32x128xf32>
    %14 = tpu.matmul %13, %3, %cst_9 {dimension_numbers = #tpu.dot_dimension_numbers<[1], [0], [0], [1], [0, 0, 1, 1], [], []>} : vector<32x8xf32>, vector<8x128xf32>, vector<32x128xf32> -> vector<32x128xf32>
    %15 = vector.shape_cast %14 : vector<32x128xf32> to vector<1x32x128xf32>
    %16 = vector.broadcast %15 : vector<1x32x128xf32> to vector<2x32x128xf32>
    %17 = arith.mulf %16, %0 : vector<2x32x128xf32>
    %cst_10 = arith.constant dense<0.000000e+00> : vector<2x128xf32>
    %18 = vector.multi_reduction <add>, %17, %cst_10 [1] : vector<2x32x128xf32> to vector<2x128xf32>
    %19 = arith.mulf %18, %18 : vector<2x128xf32>
    %cst_11 = arith.constant dense<0.000000e+00> : vector<2x8xf32>
    %20 = tpu.matmul %19, %2, %cst_11 {dimension_numbers = #tpu.dot_dimension_numbers<[1], [0], [0], [1], [0, 0, 1, 1], [], []>} : vector<2x128xf32>, vector<128x8xf32>, vector<2x8xf32> -> vector<2x8xf32>
    %cst_12 = arith.constant 1.000000e-30 : f32
    %21 = vector.broadcast %cst_12 : f32 to vector<2x8xf32>
    %22 = arith.addf %20, %21 : vector<2x8xf32>
    %23 = math.rsqrt %22 : vector<2x8xf32>
    %24 = arith.mulf %20, %23 : vector<2x8xf32>
    %cst_13 = arith.constant 1.000000e+00 : f32
    %25 = vector.broadcast %cst_13 : f32 to vector<2x8xf32>
    %26 = arith.addf %25, %20 : vector<2x8xf32>
    %27 = tpu.reciprocal %26 : vector<2x8xf32> -> vector<2x8xf32>
    %28 = arith.mulf %24, %27 : vector<2x8xf32>
    %cst_14 = arith.constant dense<0.000000e+00> : vector<2x128xf32>
    %29 = tpu.matmul %28, %3, %cst_14 {dimension_numbers = #tpu.dot_dimension_numbers<[1], [0], [0], [1], [0, 0, 1, 1], [], []>} : vector<2x8xf32>, vector<8x128xf32>, vector<2x128xf32> -> vector<2x128xf32>
    %30 = arith.mulf %18, %29 : vector<2x128xf32>
    %31 = vector.shape_cast %1 : vector<32x8xf32> to vector<1x32x8xf32>
    %32 = vector.shape_cast %31 : vector<1x32x8xf32> to vector<1x32x8xf32>
    %33 = vector.broadcast %32 : vector<1x32x8xf32> to vector<2x32x8xf32>
    %34 = vector.shape_cast %30 : vector<2x128xf32> to vector<2x1x128xf32>
    %35 = vector.broadcast %34 : vector<2x1x128xf32> to vector<2x32x128xf32>
    %36 = arith.mulf %0, %35 : vector<2x32x128xf32>
    %37 = vector.shape_cast %36 : vector<2x32x128xf32> to vector<64x128xf32>
    %cst_15 = arith.constant dense<0.000000e+00> : vector<64x8xf32>
    %38 = tpu.matmul %37, %2, %cst_15 {dimension_numbers = #tpu.dot_dimension_numbers<[1], [0], [0], [1], [0, 0, 1, 1], [], []>} : vector<64x128xf32>, vector<128x8xf32>, vector<64x8xf32> -> vector<64x8xf32>
    %39 = vector.shape_cast %38 : vector<64x8xf32> to vector<2x32x8xf32>
    %40 = arith.addf %33, %39 : vector<2x32x8xf32>
    %cst_16 = arith.constant dense<0xFF800000> : vector<2x32xf32>
    %41 = vector.multi_reduction <maximumf>, %40, %cst_16 [2] : vector<2x32x8xf32> to vector<2x32xf32>
    %42 = vector.shape_cast %41 : vector<2x32xf32> to vector<2x32x1xf32>
    %43 = vector.broadcast %42 : vector<2x32x1xf32> to vector<2x32x8xf32>
    %44 = arith.subf %40, %43 : vector<2x32x8xf32>
    %45 = math.exp %44 : vector<2x32x8xf32>
    %cst_17 = arith.constant dense<0.000000e+00> : vector<2x32xf32>
    %46 = vector.multi_reduction <add>, %45, %cst_17 [2] : vector<2x32x8xf32> to vector<2x32xf32>
    %47 = vector.shape_cast %46 : vector<2x32xf32> to vector<2x32x1xf32>
    %48 = tpu.reciprocal %47 : vector<2x32x1xf32> -> vector<2x32x1xf32>
    %49 = vector.broadcast %48 : vector<2x32x1xf32> to vector<2x32x8xf32>
    %50 = arith.mulf %45, %49 : vector<2x32x8xf32>
    %51 = vector.shape_cast %50 : vector<2x32x8xf32> to vector<64x8xf32>
    %cst_18 = arith.constant dense<0.000000e+00> : vector<64x128xf32>
    %52 = tpu.matmul %51, %3, %cst_18 {dimension_numbers = #tpu.dot_dimension_numbers<[1], [0], [0], [1], [0, 0, 1, 1], [], []>} : vector<64x8xf32>, vector<8x128xf32>, vector<64x128xf32> -> vector<64x128xf32>
    %53 = vector.shape_cast %52 : vector<64x128xf32> to vector<2x32x128xf32>
    %54 = arith.mulf %53, %0 : vector<2x32x128xf32>
    %cst_19 = arith.constant dense<0.000000e+00> : vector<2x128xf32>
    %55 = vector.multi_reduction <add>, %54, %cst_19 [1] : vector<2x32x128xf32> to vector<2x128xf32>
    %56 = arith.mulf %55, %55 : vector<2x128xf32>
    %cst_20 = arith.constant dense<0.000000e+00> : vector<2x8xf32>
    %57 = tpu.matmul %56, %2, %cst_20 {dimension_numbers = #tpu.dot_dimension_numbers<[1], [0], [0], [1], [0, 0, 1, 1], [], []>} : vector<2x128xf32>, vector<128x8xf32>, vector<2x8xf32> -> vector<2x8xf32>
    %cst_21 = arith.constant 1.000000e-30 : f32
    %58 = vector.broadcast %cst_21 : f32 to vector<2x8xf32>
    %59 = arith.addf %57, %58 : vector<2x8xf32>
    %60 = math.rsqrt %59 : vector<2x8xf32>
    %61 = arith.mulf %57, %60 : vector<2x8xf32>
    %cst_22 = arith.constant 1.000000e+00 : f32
    %62 = vector.broadcast %cst_22 : f32 to vector<2x8xf32>
    %63 = arith.addf %62, %57 : vector<2x8xf32>
    %64 = tpu.reciprocal %63 : vector<2x8xf32> -> vector<2x8xf32>
    %65 = arith.mulf %61, %64 : vector<2x8xf32>
    %cst_23 = arith.constant dense<0.000000e+00> : vector<2x128xf32>
    %66 = tpu.matmul %65, %3, %cst_23 {dimension_numbers = #tpu.dot_dimension_numbers<[1], [0], [0], [1], [0, 0, 1, 1], [], []>} : vector<2x8xf32>, vector<8x128xf32>, vector<2x128xf32> -> vector<2x128xf32>
    %67 = arith.mulf %55, %66 : vector<2x128xf32>
    %68 = vector.shape_cast %67 : vector<2x128xf32> to vector<2x1x128xf32>
    %69 = vector.broadcast %68 : vector<2x1x128xf32> to vector<2x32x128xf32>
    %70 = arith.mulf %0, %69 : vector<2x32x128xf32>
    %71 = vector.shape_cast %70 : vector<2x32x128xf32> to vector<64x128xf32>
    %cst_24 = arith.constant dense<0.000000e+00> : vector<64x8xf32>
    %72 = tpu.matmul %71, %2, %cst_24 {dimension_numbers = #tpu.dot_dimension_numbers<[1], [0], [0], [1], [0, 0, 1, 1], [], []>} : vector<64x128xf32>, vector<128x8xf32>, vector<64x8xf32> -> vector<64x8xf32>
    %73 = vector.shape_cast %72 : vector<64x8xf32> to vector<2x32x8xf32>
    %74 = arith.addf %40, %73 : vector<2x32x8xf32>
    %cst_25 = arith.constant dense<0xFF800000> : vector<2x32xf32>
    %75 = vector.multi_reduction <maximumf>, %74, %cst_25 [2] : vector<2x32x8xf32> to vector<2x32xf32>
    %76 = vector.shape_cast %75 : vector<2x32xf32> to vector<2x32x1xf32>
    %77 = vector.broadcast %76 : vector<2x32x1xf32> to vector<2x32x8xf32>
    %78 = arith.subf %74, %77 : vector<2x32x8xf32>
    %79 = math.exp %78 : vector<2x32x8xf32>
    %cst_26 = arith.constant dense<0.000000e+00> : vector<2x32xf32>
    %80 = vector.multi_reduction <add>, %79, %cst_26 [2] : vector<2x32x8xf32> to vector<2x32xf32>
    %81 = vector.shape_cast %80 : vector<2x32xf32> to vector<2x32x1xf32>
    %82 = tpu.reciprocal %81 : vector<2x32x1xf32> -> vector<2x32x1xf32>
    %83 = vector.broadcast %82 : vector<2x32x1xf32> to vector<2x32x8xf32>
    %84 = arith.mulf %79, %83 : vector<2x32x8xf32>
    %85 = vector.shape_cast %84 : vector<2x32x8xf32> to vector<64x8xf32>
    %cst_27 = arith.constant dense<0.000000e+00> : vector<64x128xf32>
    %86 = tpu.matmul %85, %3, %cst_27 {dimension_numbers = #tpu.dot_dimension_numbers<[1], [0], [0], [1], [0, 0, 1, 1], [], []>} : vector<64x8xf32>, vector<8x128xf32>, vector<64x128xf32> -> vector<64x128xf32>
    %87 = vector.shape_cast %86 : vector<64x128xf32> to vector<2x32x128xf32>
    %88 = arith.mulf %87, %0 : vector<2x32x128xf32>
    %cst_28 = arith.constant dense<0.000000e+00> : vector<2x128xf32>
    %89 = vector.multi_reduction <add>, %88, %cst_28 [1] : vector<2x32x128xf32> to vector<2x128xf32>
    %90 = arith.mulf %89, %89 : vector<2x128xf32>
    %cst_29 = arith.constant dense<0.000000e+00> : vector<2x8xf32>
    %91 = tpu.matmul %90, %2, %cst_29 {dimension_numbers = #tpu.dot_dimension_numbers<[1], [0], [0], [1], [0, 0, 1, 1], [], []>} : vector<2x128xf32>, vector<128x8xf32>, vector<2x8xf32> -> vector<2x8xf32>
    %cst_30 = arith.constant 1.000000e-30 : f32
    %92 = vector.broadcast %cst_30 : f32 to vector<2x8xf32>
    %93 = arith.addf %91, %92 : vector<2x8xf32>
    %94 = math.rsqrt %93 : vector<2x8xf32>
    %95 = arith.mulf %91, %94 : vector<2x8xf32>
    %cst_31 = arith.constant 1.000000e+00 : f32
    %96 = vector.broadcast %cst_31 : f32 to vector<2x8xf32>
    %97 = arith.addf %96, %91 : vector<2x8xf32>
    %98 = tpu.reciprocal %97 : vector<2x8xf32> -> vector<2x8xf32>
    %99 = arith.mulf %95, %98 : vector<2x8xf32>
    %cst_32 = arith.constant dense<0.000000e+00> : vector<2x128xf32>
    %100 = tpu.matmul %99, %3, %cst_32 {dimension_numbers = #tpu.dot_dimension_numbers<[1], [0], [0], [1], [0, 0, 1, 1], [], []>} : vector<2x8xf32>, vector<8x128xf32>, vector<2x128xf32> -> vector<2x128xf32>
    %101 = arith.mulf %89, %100 : vector<2x128xf32>
    %102 = vector.shape_cast %101 : vector<2x128xf32> to vector<2x1x128xf32>
    %103 = vector.broadcast %102 : vector<2x1x128xf32> to vector<2x32x128xf32>
    %104 = arith.mulf %0, %103 : vector<2x32x128xf32>
    %105 = vector.shape_cast %104 : vector<2x32x128xf32> to vector<64x128xf32>
    %cst_33 = arith.constant dense<0.000000e+00> : vector<64x8xf32>
    %106 = tpu.matmul %105, %2, %cst_33 {dimension_numbers = #tpu.dot_dimension_numbers<[1], [0], [0], [1], [0, 0, 1, 1], [], []>} : vector<64x128xf32>, vector<128x8xf32>, vector<64x8xf32> -> vector<64x8xf32>
    %107 = vector.shape_cast %106 : vector<64x8xf32> to vector<2x32x8xf32>
    %108 = arith.addf %74, %107 : vector<2x32x8xf32>
    %cst_34 = arith.constant dense<0xFF800000> : vector<2x32xf32>
    %109 = vector.multi_reduction <maximumf>, %108, %cst_34 [2] : vector<2x32x8xf32> to vector<2x32xf32>
    %110 = vector.shape_cast %109 : vector<2x32xf32> to vector<2x32x1xf32>
    %111 = vector.broadcast %110 : vector<2x32x1xf32> to vector<2x32x8xf32>
    %112 = arith.subf %108, %111 : vector<2x32x8xf32>
    %113 = math.exp %112 : vector<2x32x8xf32>
    %cst_35 = arith.constant dense<0.000000e+00> : vector<2x32xf32>
    %114 = vector.multi_reduction <add>, %113, %cst_35 [2] : vector<2x32x8xf32> to vector<2x32xf32>
    %115 = vector.shape_cast %114 : vector<2x32xf32> to vector<2x32x1xf32>
    %116 = tpu.reciprocal %115 : vector<2x32x1xf32> -> vector<2x32x1xf32>
    %117 = vector.broadcast %116 : vector<2x32x1xf32> to vector<2x32x8xf32>
    %118 = arith.mulf %113, %117 : vector<2x32x8xf32>
    %119 = vector.shape_cast %118 : vector<2x32x8xf32> to vector<64x8xf32>
    %cst_36 = arith.constant dense<0.000000e+00> : vector<64x128xf32>
    %120 = tpu.matmul %119, %3, %cst_36 {dimension_numbers = #tpu.dot_dimension_numbers<[1], [0], [0], [1], [0, 0, 1, 1], [], []>} : vector<64x8xf32>, vector<8x128xf32>, vector<64x128xf32> -> vector<64x128xf32>
    %121 = vector.shape_cast %120 : vector<64x128xf32> to vector<2x32x128xf32>
    %122 = arith.mulf %121, %0 : vector<2x32x128xf32>
    %cst_37 = arith.constant dense<0.000000e+00> : vector<2x128xf32>
    %123 = vector.multi_reduction <add>, %122, %cst_37 [1] : vector<2x32x128xf32> to vector<2x128xf32>
    %124 = arith.mulf %123, %123 : vector<2x128xf32>
    %cst_38 = arith.constant dense<0.000000e+00> : vector<2x8xf32>
    %125 = tpu.matmul %124, %2, %cst_38 {dimension_numbers = #tpu.dot_dimension_numbers<[1], [0], [0], [1], [0, 0, 1, 1], [], []>} : vector<2x128xf32>, vector<128x8xf32>, vector<2x8xf32> -> vector<2x8xf32>
    %cst_39 = arith.constant 1.000000e-30 : f32
    %126 = vector.broadcast %cst_39 : f32 to vector<2x8xf32>
    %127 = arith.addf %125, %126 : vector<2x8xf32>
    %128 = math.rsqrt %127 : vector<2x8xf32>
    %129 = arith.mulf %125, %128 : vector<2x8xf32>
    %cst_40 = arith.constant 1.000000e+00 : f32
    %130 = vector.broadcast %cst_40 : f32 to vector<2x8xf32>
    %131 = arith.addf %130, %125 : vector<2x8xf32>
    %132 = tpu.reciprocal %131 : vector<2x8xf32> -> vector<2x8xf32>
    %133 = arith.mulf %129, %132 : vector<2x8xf32>
    %cst_41 = arith.constant dense<0.000000e+00> : vector<2x128xf32>
    %134 = tpu.matmul %133, %3, %cst_41 {dimension_numbers = #tpu.dot_dimension_numbers<[1], [0], [0], [1], [0, 0, 1, 1], [], []>} : vector<2x8xf32>, vector<8x128xf32>, vector<2x128xf32> -> vector<2x128xf32>
    %135 = arith.mulf %123, %134 : vector<2x128xf32>
    %c0_42 = arith.constant 0 : index
    %c0_43 = arith.constant 0 : index
    %136 = vector.load %arg5[%c0_42, %c0_43] : memref<2x128xf32, #tpu.memory_space<vmem>>, vector<2x128xf32>
    tpu.vector_store %arg5[%c0_42, %c0_43], %135 {strides = array<i32>} : memref<2x128xf32, #tpu.memory_space<vmem>>, vector<2x128xf32>,
    return
  }
  func.func @transform_0(%arg0: i32) -> (i32, i32) {
    %c0_i32 = arith.constant 0 : i32
    %c0_i32_0 = arith.constant 0 : i32
    %c0_i32_1 = arith.constant 0 : i32
    return %c0_i32, %c0_i32_0 : i32, i32
  }
  func.func @transform_1(%arg0: i32) -> (i32, i32) {
    %c0_i32 = arith.constant 0 : i32
    %c0_i32_0 = arith.constant 0 : i32
    %c0_i32_1 = arith.constant 0 : i32
    return %c0_i32, %c0_i32_0 : i32, i32
  }
  func.func @transform_2(%arg0: i32) -> (i32, i32) {
    %c0_i32 = arith.constant 0 : i32
    %c0_i32_0 = arith.constant 0 : i32
    %c0_i32_1 = arith.constant 0 : i32
    return %c0_i32, %c0_i32_0 : i32, i32
  }
  func.func @transform_3(%arg0: i32) -> (i32, i32, i32) {
    %c0_i32 = arith.constant 0 : i32
    %c0_i32_0 = arith.constant 0 : i32
    %c0_i32_1 = arith.constant 0 : i32
    return %arg0, %c0_i32, %c0_i32_0 : i32, i32, i32
  }
  func.func @transform_4(%arg0: i32) -> (i32, i32) {
    %c0_i32 = arith.constant 0 : i32
    %c0_i32_0 = arith.constant 0 : i32
    return %arg0, %c0_i32 : i32, i32
  }
}

</mosaic_0001>

<bundles_post_ra>
// kernel: tpu_custom_call.1
= control target key start
LH: loop header
LB: loop body
LE: loop exit
PB: predicated region body
PF: predicated region fallthrough
CT: control target
= control target key end

     0   :  { %vm47_vm0 = vcmask 64512   ;;  %s3519_s0 = inlined_call_operand.vmem [shape: f32[32,8], index: 0, kind: input, shape index: {}]   ;;  %s3520_s1 = inlined_call_operand.vmem [shape: f32[128,8], index: 1, kind: input, shape index: {}]   ;;  %s3521_s2 = inlined_call_operand.vmem [shape: f32[8,128], index: 2, kind: input, shape index: {}]   ;;  %s3522_s3 = inlined_call_operand.vmem [shape: f32[2,32,128], index: 3, kind: input, shape index: {}]   ;;  %s3523_s4 = inlined_call_operand.hbm [shape: f32[2,128], index: 4, kind: output, shape index: {}]  }
   0x1   :  { %v2939_v0 = vld [vmem:[%s3519_s0] sm:$0xff]  ;;  %v2944_v1 = vld [vmem:[%s3519_s0 + $0x10] sm:$0xff]  ;;  %v2949_v2 = vld [vmem:[%s3519_s0 + $0x8] sm:$0xff] }
   0x2   :  { %v48_v3 = vsel %vm47_vm0, %v2939_v0, -inf  ;;  %v54_v4 = vsel %vm47_vm0, %v2944_v1, -inf  ;;  %v2958_v5 = vld [vmem:[%s3519_s0 + $0x18] sm:$0xff] }
   0x3   :  { %9 = vsyncpa [#allocation3], 0  ;;  %49 = vmax.xlane.f32.xlu0 %v48_v3  ;;  %55 = vmax.xlane.f32.xlu1 %v54_v4  ;;  %v51_v6 = vsel %vm47_vm0, %v2949_v2, -inf  ;;  %v57_v7 = vsel %vm47_vm0, %v2958_v5, -inf  ;;  %v2975_v28 = vld [vmem:[%s3521_s2] sm:$0xff]  ;;  %v31_v30 = vld [vmem:[%s3520_s1 + $0x8] sm:$0xff] }
   0x4   :  { %2208 = vmatprep.subr.mxu0 %v2975_v28  ;;  %v30_v29 = vld [vmem:[%s3520_s1] sm:$0xff]  ;;  %v2907_v31 = vmov 0.0|0.0   ;;  %v32_v45 = vld [vmem:[%s3520_s1 + $0x10] sm:$0xff]  ;;  %v33_v46 = vld [vmem:[%s3520_s1 + $0x18] sm:$0xff]  ;;  %vm2908_vm1 = vmmov 0   ;;  %v2909_v4 = vmov 0.0  }
   0x5   :  { %2209 = vmatpush3.msra.mxu0 %v2975_v28  ;;  %2550 = vmatprep.subr.bf16.mxu1 %v2907_v31  ;;  %v2986_v32 = vpack.c.bf16 %v31_v30, %v30_v29  ;;  %v3000_v47 = vpack.c.bf16 %v33_v46, %v32_v45  ;;  %v34_v48 = vld [vmem:[%s3520_s1 + $0x20] sm:$0xff]  ;;  %v35_v49 = vld [vmem:[%s3520_s1 + $0x28] sm:$0xff]  ;;  %v36_v51 = vld [vmem:[%s3520_s1 + $0x30] sm:$0xff]  ;;  %vm219_vm2 = vcmask 1041409  }
   0x6   :  { %v3010_v50 = vpack.c.bf16 %v35_v49, %v34_v48  ;;  %v37_v52 = vld [vmem:[%s3520_s1 + $0x38] sm:$0xff]  ;;  %v38_v54 = vld [vmem:[%s3520_s1 + $0x40] sm:$0xff]  ;;  %v39_v55 = vld [vmem:[%s3520_s1 + $0x48] sm:$0xff]  ;;  %2248 = vmatprep.mubr.msk.f32.mxu1 %vm2908_vm1, %v2909_v4  ;;  %2251 = vmatprep.subr.mxu0 %v2909_v4 }
   0x7   :  { %52 = vmax.xlane.f32.xlu0 %v51_v6  ;;  %58 = vmax.xlane.f32.xlu1 %v57_v7  ;;  %v3020_v53 = vpack.c.bf16 %v37_v52, %v36_v51  ;;  %v3030_v56 = vpack.c.bf16 %v39_v55, %v38_v54  ;;  %v40_v57 = vld [vmem:[%s3520_s1 + $0x50] sm:$0xff]  ;;  %v41_v58 = vld [vmem:[%s3520_s1 + $0x58] sm:$0xff]  ;;  %v42_v60 = vld [vmem:[%s3520_s1 + $0x60] sm:$0xff] }
   0x8   :  { %2552 = vmatpush3.bf16.msra.mxu1 %v2986_v32  ;;  %v3040_v59 = vpack.c.bf16 %v41_v58, %v40_v57  ;;  %v43_v61 = vld [vmem:[%s3520_s1 + $0x68] sm:$0xff]  ;;  %v44_v62 = vld [vmem:[%s3520_s1 + $0x70] sm:$0xff]  ;;  %v45_v3 = vld [vmem:[%s3520_s1 + $0x78] sm:$0xff] }
   0x9   :  { %2553 = vmatprep.subr.bf16.mxu1 %v2907_v31  ;;  %v3053_v63 = vpack.c.bf16 %v43_v61, %v42_v60  ;;  %v3065_v6 = vpack.c.bf16 %v45_v3, %v44_v62  ;;  %v3074_v7 = vld [vmem:[%s3522_s3 + $0x8] sm:$0xff] }
   0xc   :  { %2555 = vmatpush3.bf16.msra.mxu1 %v3000_v47 }
   0xd   :  { %2556 = vmatprep.subr.bf16.mxu1 %v2907_v31 }
  0x10   :  { %2558 = vmatpush3.bf16.msra.mxu1 %v3010_v50 }
  0x11   :  { %2559 = vmatprep.subr.bf16.mxu1 %v2907_v31 }
  0x14   :  { %2561 = vmatpush3.bf16.msra.mxu1 %v3020_v53 }
  0x15   :  { %2562 = vmatprep.subr.bf16.mxu1 %v2907_v31 }
  0x18   :  { %2564 = vmatpush3.bf16.msra.mxu1 %v3030_v56 }
  0x19   :  { %2565 = vmatprep.subr.bf16.mxu1 %v2907_v31 }
  0x1c   :  { %2567 = vmatpush3.bf16.msra.mxu1 %v3040_v59 }
  0x1d   :  { %2568 = vmatprep.subr.bf16.mxu1 %v2907_v31 }
  0x20   :  { %2570 = vmatpush3.bf16.msra.mxu1 %v3053_v63 }
  0x21   :  { %2571 = vmatprep.subr.bf16.mxu1 %v2907_v31 }
  0x24   :  { %2573 = vmatpush3.bf16.msra.mxu1 %v3065_v6 }
  0x25   :  { %2300 = vmatprep.subr.mxu1 %v2975_v28 }
  0x90   :  { %v50_v8 = vpop.xlane.xlu0 %49  ;;  %v56_v9 = vpop.xlane.xlu1 %55 }
  0x91   :  { %v60_v10 = vsub.f32 %v2939_v0, %v50_v8  ;;  %v62_v11 = vsub.f32 %v2944_v1, %v56_v9  ;;  %v3079_v8 = vld [vmem:[%s3522_s3 + $0x28] sm:$0xff]  ;;  %v3084_v9 = vld [vmem:[%s3522_s3] sm:$0xff] }
  0x93   :  { %v64_v12 = vmul.f32 1.442695, %v60_v10  ;;  %v68_v13 = vmul.f32 1.442695, %v62_v11  ;;  %v3089_v10 = vld [vmem:[%s3522_s3 + $0x20] sm:$0xff] }
  0x94   :  { %v53_v14 = vpop.xlane.xlu0 %52  ;;  %v59_v15 = vpop.xlane.xlu1 %58 }
  0x95   :  { %2746 = vpow2.f32 %v64_v12  ;;  %v61_v16 = vsub.f32 %v2949_v2, %v53_v14  ;;  %v63_v17 = vsub.f32 %v2958_v5, %v59_v15 }
  0x96   :  { %2748 = vpow2.f32 %v68_v13 }
  0x97   :  { %v66_v18 = vmul.f32 1.442695, %v61_v16  ;;  %v70_v19 = vmul.f32 1.442695, %v63_v17  ;;  %v3098_v17 = vld [vmem:[%s3522_s3 + $0x10] sm:$0xff] }
  0x99   :  { %2750 = vpow2.f32 %v66_v18  ;;  %v3103_v18 = vld [vmem:[%s3522_s3 + $0x30] sm:$0xff] }
  0x9a   :  { %2752 = vpow2.f32 %v70_v19 }
  0x9f   :  { %v2747_v20 = vpop.eup %2746 }
  0xa0   :  { %v2749_v21 = vpop.eup %2748  ;;  %v72_v22 = vsel %vm47_vm0, %v2747_v20, 0.0 }
  0xa1   :  { %73 = vadd.xlane.f32.xlu0 %v72_v22  ;;  %v78_v23 = vsel %vm47_vm0, %v2749_v21, 0.0  ;;  %v3108_v22 = vld [vmem:[%s3522_s3 + $0x18] sm:$0xff] }
  0xa3   :  { %v2751_v24 = vpop.eup %2750 }
  0xa4   :  { %v2753_v25 = vpop.eup %2752  ;;  %v75_v26 = vsel %vm47_vm0, %v2751_v24, 0.0 }
  0xa5   :  { %79 = vadd.xlane.f32.xlu0 %v78_v23  ;;  %76 = vadd.xlane.f32.xlu1 %v75_v26  ;;  %v81_v27 = vsel %vm47_vm0, %v2753_v25, 0.0  ;;  %v3113_v23 = vld [vmem:[%s3522_s3 + $0x38] sm:$0xff] }
  0xa9   :  { %82 = vadd.xlane.f32.xlu1 %v81_v27 }
 0x12e   :  { %v74_v33 = vpop.xlane.xlu0 %73 }
 0x12f   :  { %2754 = vrcp.f32 %v74_v33 }
 0x132   :  { %v77_v34 = vpop.xlane.xlu1 %76  ;;  %v80_v35 = vpop.xlane.xlu0 %79 }
 0x133   :  { %2756 = vrcp.f32 %v77_v34 }
 0x134   :  { %2758 = vrcp.f32 %v80_v35 }
 0x136   :  { %v83_v36 = vpop.xlane.xlu1 %82 }
 0x137   :  { %2760 = vrcp.f32 %v83_v36 }
 0x139   :  { %v2755_v37 = vpop.eup %2754 }
 0x13a   :  { %v88_v38 = vmul.f32 %v2755_v37, %v2747_v20 }
 0x13c   :  { %2210 = vmatprep.mubr.msk.f32.mxu0 %vm47_vm0, %v88_v38 }
 0x13d   :  { %v2757_v39 = vpop.eup %2756 }
 0x13e   :  { %v2759_v40 = vpop.eup %2758  ;;  %v89_v41 = vmul.f32 %v2757_v39, %v2751_v24 }
 0x13f   :  { %v90_v42 = vmul.f32 %v2759_v40, %v2749_v21 }
 0x140   :  { %2211 = vmatmul.mubr.msk.f32.vlgmr.msra.gmra.mrb[0].mxu0 %vm47_vm0, %v89_v41 }
 0x141   :  { %v2761_v43 = vpop.eup %2760  ;;  %2213 = vmatprep.mubr.msk.f32.mxu0 %vm47_vm0, %v90_v42  ;;  %2252 = vmatpush3.msra.mxu0 %v2975_v28 }
 0x142   :  { %v91_v44 = vmul.f32 %v2761_v43, %v2753_v25  ;;  %2575 = vmatprep.subr.bf16.mxu0 %v2986_v32 }
 0x144   :  { %2214 = vmatmul.mubr.msk.f32.gmra.mrb[2].mxu0 %vm47_vm0, %v91_v44 }
 0x145   :  { %2253 = vmatprep.mubr.msk.f32.mxu0 %vm2908_vm1, %v2909_v4 }
 0x213   :  { %v2212_v11 = vpop.f32.mrb[0].mxu0 }
 0x214   :  { %v190_v12 = vmul.f32 %v2212_v11, %v3074_v7  ;;  %v194_v13 = vmul.f32 %v2212_v11, %v3079_v8  ;;  %v170_v14 = vpop.f32.mrb[1].mxu0  ;;  %v377_v11 = vlaneseq }
 0x215   :  { %v189_v15 = vmul.f32 %v170_v14, %v3084_v9  ;;  %v193_v16 = vmul.f32 %v170_v14, %v3089_v10 }
 0x217   :  { %v197_v19 = vadd.f32 %v190_v12, %v189_v15  ;;  %v206_v20 = vadd.f32 %v194_v13, %v193_v16  ;;  %v2215_v21 = vpop.f32.mrb[2].mxu0  ;;  %v378_v12 = vshrl.u32 %v377_v11, 7 }
 0x218   :  { %v180_v24 = vpop.f32.mrb[3].mxu0  ;;  %v192_v27 = vmul.f32 %v2215_v21, %v3108_v22  ;;  %v196_v29 = vmul.f32 %v2215_v21, %v3113_v23 }
 0x219   :  { %v191_v25 = vmul.f32 %v180_v24, %v3098_v17  ;;  %v195_v26 = vmul.f32 %v180_v24, %v3103_v18  ;;  %v3139_v13 = vsub.s32 0, %v378_v12 }
 0x21b   :  { %v198_v30 = vadd.f32 %v197_v19, %v191_v25  ;;  %v207_v33 = vadd.f32 %v206_v20, %v195_v26 }
 0x21d   :  { %v199_v34 = vadd.f32 %v198_v30, %v192_v27  ;;  %v208_v35 = vadd.f32 %v207_v33, %v196_v29 }
 0x21f   :  { %v200_v36 = vrot.slane %v199_v34, 4  ;;  %v209_v37 = vrot.slane %v208_v35, 4 }
 0x221   :  { %v201_v38 = vadd.f32 %v200_v36, %v199_v34  ;;  %v210_v39 = vadd.f32 %v209_v37, %v208_v35 }
 0x223   :  { %v202_v40 = vrot.slane %v201_v38, 2  ;;  %v211_v41 = vrot.slane %v210_v39, 2 }
 0x225   :  { %v203_v42 = vadd.f32 %v202_v40, %v201_v38  ;;  %v212_v43 = vadd.f32 %v211_v41, %v210_v39 }
 0x227   :  { %v204_v44 = vrot.slane %v203_v42, 1  ;;  %v213_v45 = vrot.slane %v212_v43, 1 }
 0x229   :  { %v205_v46 = vadd.f32 %v204_v44, %v203_v42  ;;  %v214_v48 = vadd.f32 %v213_v45, %v212_v43 }
 0x22b   :  { %v215_v49 = vmul.f32 %v205_v46, %v205_v46  ;;  %v216_v51 = vmul.f32 %v214_v48, %v214_v48 }
 0x22d   :  { %v220_v52 = vsel %vm219_vm2, %v216_v51, %v215_v49 }
 0x22e   :  { %2249 = vmatmul.mubr.f32.vlgmr.msra.gmra.mrb[0].mxu1 %v220_v52 }
 0x22f   :  { %2301 = vmatpush3.msra.mxu1 %v2975_v28 }
 0x230   :  { %2606 = vmatprep.subr.bf16.mxu1 %v2907_v31 }
 0x301   :  { %v288_v54 = vpop.f32.mrb[0].mxu1 }
 0x302   :  { %v292_v55 = vadd.f32 1e-30, %v288_v54  ;;  %v295_v57 = vadd.f32 1.0, %v288_v54  ;;  %v2250_v58 = vpop.f32.mrb[1].mxu1 }
 0x304   :  { %2762 = vrsqrt.f32 %v292_v55 }
 0x305   :  { %2764 = vrcp.f32 %v295_v57 }
 0x30e   :  { %v2763_v60 = vpop.eup %2762 }
 0x30f   :  { %v294_v61 = vmul.f32 %v2763_v60, %v288_v54  ;;  %v2765_v62 = vpop.eup %2764 }
 0x311   :  { %v297_v3 = vmul.f32 %v2765_v62, %v294_v61 }
 0x313   :  { %2254 = vmatmul.mubr.msk.f32.vlgmr.msra.gmra.mrb[4].mxu0 %vm47_vm0, %v297_v3 }
 0x314   :  { %2577 = vmatpush3.bf16.msra.mxu0 %v2986_v32 }
 0x315   :  { %2579 = vmatprep.subr.bf16.mxu0 %v3000_v47 }
 0x318   :  { %2581 = vmatpush3.bf16.msra.mxu0 %v3000_v47 }
 0x319   :  { %2583 = vmatprep.subr.bf16.mxu0 %v3010_v50 }
 0x31c   :  { %2585 = vmatpush3.bf16.msra.mxu0 %v3010_v50 }
 0x31d   :  { %2587 = vmatprep.subr.bf16.mxu0 %v3020_v53 }
 0x320   :  { %2589 = vmatpush3.bf16.msra.mxu0 %v3020_v53 }
 0x321   :  { %2591 = vmatprep.subr.bf16.mxu0 %v3030_v56 }
 0x324   :  { %2593 = vmatpush3.bf16.msra.mxu0 %v3030_v56 }
 0x325   :  { %2595 = vmatprep.subr.bf16.mxu0 %v3040_v59 }
 0x328   :  { %2597 = vmatpush3.bf16.msra.mxu0 %v3040_v59 }
 0x329   :  { %2599 = vmatprep.subr.bf16.mxu0 %v3053_v63 }
 0x32c   :  { %2601 = vmatpush3.bf16.msra.mxu0 %v3053_v63 }
 0x32d   :  { %2603 = vmatprep.subr.bf16.mxu0 %v3065_v6 }
 0x330   :  { %2605 = vmatpush3.bf16.msra.mxu0 %v3065_v6 }
 0x331   :  { %2349 = vmatprep.subr.mxu0 %v2909_v4 }
 0x3e6   :  { %v367_v14 = vpop.f32.mrb[4].mxu0 }
 0x3e7   :  { %v372_v15 = vrot.slane %v367_v14, 1  ;;  %v375_v16 = vmul.f32 %v367_v14, %v205_v46  ;;  %v2255_v19 = vpop.f32.mrb[5].mxu0 }
 0x3e9   :  { %v376_v20 = vmul.f32 %v372_v15, %v214_v48  ;;  %v380_v21 = vrot.slane %v375_v16, %v3139_v13 }
 0x3eb   :  { %v385_v24 = vmul.f32 %v380_v21, %v3084_v9  ;;  %v386_v25 = vmul.f32 %v380_v21, %v3074_v7  ;;  %v384_v26 = vrot.slane %v376_v20, %v3139_v13  ;;  %v387_v27 = vmul.f32 %v380_v21, %v3098_v17 }
 0x3ec   :  { %v388_v29 = vmul.f32 %v380_v21, %v3108_v22 }
 0x3ed   :  { %2288 = vmatprep.mubr.f32.mxu0 %v385_v24  ;;  %v389_v30 = vmul.f32 %v384_v26, %v3089_v10  ;;  %v390_v33 = vmul.f32 %v384_v26, %v3079_v8  ;;  %v391_v34 = vmul.f32 %v384_v26, %v3103_v18  ;;  %v392_v35 = vmul.f32 %v384_v26, %v3113_v23 }
 0x3ee   :  { %2289 = vmatmul.mubr.f32.vlgmr.msra.gmra.mrb[6].mxu0 %v386_v25 }
 0x3ef   :  { %2291 = vmatprep.mubr.f32.mxu0 %v387_v27  ;;  %2350 = vmatpush3.msra.mxu0 %v2975_v28 }
 0x3f0   :  { %2631 = vmatprep.subr.bf16.mxu0 %v2986_v32 }
 0x3f2   :  { %2292 = vmatmul.mubr.f32.gmra.mrb[8].mxu0 %v388_v29 }
 0x3f3   :  { %2294 = vmatprep.mubr.f32.mxu0 %v389_v30 }
 0x3f6   :  { %2295 = vmatmul.mubr.f32.gmra.mrb[10].mxu0 %v390_v33 }
 0x3f7   :  { %2297 = vmatprep.mubr.f32.mxu0 %v391_v34 }
 0x3fa   :  { %2298 = vmatmul.mubr.f32.gmra.mrb[12].mxu0 %v392_v35 }
 0x3fb   :  { %2351 = vmatprep.mubr.msk.f32.mxu0 %vm2908_vm1, %v2909_v4 }
 0x4c1   :  { %v2290_v36 = vpop.f32.mrb[6].mxu0 }
 0x4c2   :  { %v3156_v37 = vadd.f32 %v2290_v36, %v2949_v2  ;;  %v459_v38 = vpop.f32.mrb[7].mxu0 }
 0x4c3   :  { %v3159_v39 = vadd.f32 %v459_v38, %v2939_v0 }
 0x4c4   :  { %v509_v40 = vsel %vm47_vm0, %v3156_v37, -inf }
 0x4c5   :  { %510 = vmax.xlane.f32.xlu1 %v509_v40  ;;  %v2293_v41 = vpop.f32.mrb[8].mxu0  ;;  %v506_v42 = vsel %vm47_vm0, %v3159_v39, -inf }
 0x4c6   :  { %v3166_v43 = vadd.f32 %v2293_v41, %v2958_v5  ;;  %507 = vmax.xlane.f32.xlu0 %v506_v42  ;;  %v469_v44 = vpop.f32.mrb[9].mxu0 }
 0x4c7   :  { %v3169_v45 = vadd.f32 %v469_v44, %v2944_v1 }
 0x4c8   :  { %v515_v46 = vsel %vm47_vm0, %v3166_v43, -inf }
 0x4c9   :  { %516 = vmax.xlane.f32.xlu1 %v515_v46  ;;  %v2296_v48 = vpop.f32.mrb[10].mxu0  ;;  %v512_v49 = vsel %vm47_vm0, %v3169_v45, -inf }
 0x4ca   :  { %v3176_v51 = vadd.f32 %v2296_v48, %v2949_v2  ;;  %513 = vmax.xlane.f32.xlu0 %v512_v49  ;;  %v479_v52 = vpop.f32.mrb[11].mxu0 }
 0x4cb   :  { %v3179_v54 = vadd.f32 %v479_v52, %v2939_v0 }
 0x4cc   :  { %v521_v55 = vsel %vm47_vm0, %v3176_v51, -inf }
 0x4cd   :  { %522 = vmax.xlane.f32.xlu1 %v521_v55  ;;  %v2299_v57 = vpop.f32.mrb[12].mxu0  ;;  %v518_v58 = vsel %vm47_vm0, %v3179_v54, -inf }
 0x4ce   :  { %v3186_v60 = vadd.f32 %v2299_v57, %v2958_v5  ;;  %519 = vmax.xlane.f32.xlu0 %v518_v58  ;;  %v489_v61 = vpop.f32.mrb[13].mxu0 }
 0x4cf   :  { %v3189_v2 = vadd.f32 %v489_v61, %v2944_v1 }
 0x4d0   :  { %v527_v0 = vsel %vm47_vm0, %v3186_v60, -inf }
 0x4d1   :  { %528 = vmax.xlane.f32.xlu1 %v527_v0  ;;  %v524_v62 = vsel %vm47_vm0, %v3189_v2, -inf }
 0x4d2   :  { %525 = vmax.xlane.f32.xlu0 %v524_v62 }
 0x552   :  { %v511_v3 = vpop.xlane.xlu1 %510 }
 0x553   :  { %v531_v11 = vsub.f32 %v3156_v37, %v511_v3  ;;  %v508_v12 = vpop.xlane.xlu0 %507 }
 0x554   :  { %v530_v5 = vsub.f32 %v3159_v39, %v508_v12 }
 0x555   :  { %v540_v14 = vmul.f32 1.442695, %v531_v11 }
 0x556   :  { %v538_v15 = vmul.f32 1.442695, %v530_v5  ;;  %v517_v16 = vpop.xlane.xlu1 %516 }
 0x557   :  { %2766 = vpow2.f32 %v540_v14  ;;  %v533_v1 = vsub.f32 %v3166_v43, %v517_v16  ;;  %v514_v19 = vpop.xlane.xlu0 %513 }
 0x558   :  { %2768 = vpow2.f32 %v538_v15  ;;  %v532_v20 = vsub.f32 %v3169_v45, %v514_v19 }
 0x559   :  { %v544_v21 = vmul.f32 1.442695, %v533_v1 }
 0x55a   :  { %v542_v24 = vmul.f32 1.442695, %v532_v20  ;;  %v523_v25 = vpop.xlane.xlu1 %522 }
 0x55b   :  { %2770 = vpow2.f32 %v544_v21  ;;  %v535_v26 = vsub.f32 %v3176_v51, %v523_v25  ;;  %v520_v27 = vpop.xlane.xlu0 %519 }
 0x55c   :  { %2772 = vpow2.f32 %v542_v24  ;;  %v534_v29 = vsub.f32 %v3179_v54, %v520_v27 }
 0x55d   :  { %v548_v30 = vmul.f32 1.442695, %v535_v26 }
 0x55e   :  { %v546_v33 = vmul.f32 1.442695, %v534_v29  ;;  %v529_v34 = vpop.xlane.xlu1 %528 }
 0x55f   :  { %2774 = vpow2.f32 %v548_v30  ;;  %v537_v35 = vsub.f32 %v3186_v60, %v529_v34  ;;  %v526_v36 = vpop.xlane.xlu0 %525 }
 0x560   :  { %2776 = vpow2.f32 %v546_v33  ;;  %v536_v38 = vsub.f32 %v3189_v2, %v526_v36 }
 0x561   :  { %v2767_v40 = vpop.eup %2766  ;;  %v552_v41 = vmul.f32 1.442695, %v537_v35 }
 0x562   :  { %v2769_v42 = vpop.eup %2768  ;;  %v550_v44 = vmul.f32 1.442695, %v536_v38  ;;  %v557_v46 = vsel %vm47_vm0, %v2767_v40, 0.0 }
 0x563   :  { %2778 = vpow2.f32 %v552_v41  ;;  %558 = vadd.xlane.f32.xlu1 %v557_v46  ;;  %v554_v48 = vsel %vm47_vm0, %v2769_v42, 0.0 }
 0x564   :  { %2780 = vpow2.f32 %v550_v44  ;;  %555 = vadd.xlane.f32.xlu0 %v554_v48 }
 0x565   :  { %v2771_v49 = vpop.eup %2770 }
 0x566   :  { %v2773_v52 = vpop.eup %2772  ;;  %v563_v55 = vsel %vm47_vm0, %v2771_v49, 0.0 }
 0x567   :  { %564 = vadd.xlane.f32.xlu1 %v563_v55  ;;  %v560_v57 = vsel %vm47_vm0, %v2773_v52, 0.0 }
 0x568   :  { %561 = vadd.xlane.f32.xlu0 %v560_v57 }
 0x569   :  { %v2775_v58 = vpop.eup %2774 }
 0x56a   :  { %v2777_v61 = vpop.eup %2776  ;;  %v569_v0 = vsel %vm47_vm0, %v2775_v58, 0.0 }
 0x56b   :  { %570 = vadd.xlane.f32.xlu1 %v569_v0  ;;  %v566_v62 = vsel %vm47_vm0, %v2777_v61, 0.0 }
 0x56c   :  { %567 = vadd.xlane.f32.xlu0 %v566_v62 }
 0x56d   :  { %v2779_v3 = vpop.eup %2778 }
 0x56e   :  { %v2781_v11 = vpop.eup %2780  ;;  %v575_v12 = vsel %vm47_vm0, %v2779_v3, 0.0 }
 0x56f   :  { %576 = vadd.xlane.f32.xlu1 %v575_v12  ;;  %v572_v5 = vsel %vm47_vm0, %v2781_v11, 0.0 }
 0x570   :  { %573 = vadd.xlane.f32.xlu0 %v572_v5 }
 0x5f0   :  { %v559_v14 = vpop.xlane.xlu1 %558 }
 0x5f1   :  { %2782 = vrcp.f32 %v559_v14  ;;  %v556_v15 = vpop.xlane.xlu0 %555 }
 0x5f2   :  { %2784 = vrcp.f32 %v556_v15 }
 0x5f4   :  { %v565_v16 = vpop.xlane.xlu1 %564 }
 0x5f5   :  { %2786 = vrcp.f32 %v565_v16  ;;  %v562_v1 = vpop.xlane.xlu0 %561 }
 0x5f6   :  { %2788 = vrcp.f32 %v562_v1 }
 0x5f8   :  { %v571_v19 = vpop.xlane.xlu1 %570 }
 0x5f9   :  { %2790 = vrcp.f32 %v571_v19  ;;  %v568_v20 = vpop.xlane.xlu0 %567 }
 0x5fa   :  { %2792 = vrcp.f32 %v568_v20 }
 0x5fb   :  { %v2783_v21 = vpop.eup %2782 }
 0x5fc   :  { %v2785_v24 = vpop.eup %2784  ;;  %v577_v25 = vpop.xlane.xlu1 %576  ;;  %v587_v29 = vmul.f32 %v2783_v21, %v2767_v40 }
 0x5fd   :  { %2794 = vrcp.f32 %v577_v25  ;;  %v574_v26 = vpop.xlane.xlu0 %573  ;;  %v586_v27 = vmul.f32 %v2785_v24, %v2769_v42 }
 0x5fe   :  { %2796 = vrcp.f32 %v574_v26 }
 0x5ff   :  { %v2787_v30 = vpop.eup %2786  ;;  %2302 = vmatprep.mubr.msk.f32.mxu1 %vm47_vm0, %v586_v27 }
 0x600   :  { %v2789_v33 = vpop.eup %2788  ;;  %2303 = vmatmul.mubr.msk.f32.vlgmr.msra.gmra.mrb[2].mxu1 %vm47_vm0, %v587_v29  ;;  %v589_v35 = vmul.f32 %v2787_v30, %v2771_v49 }
 0x601   :  { %v588_v34 = vmul.f32 %v2789_v33, %v2773_v52  ;;  %2608 = vmatpush3.bf16.msra.mxu1 %v2986_v32 }
 0x602   :  { %2609 = vmatprep.subr.bf16.mxu1 %v2907_v31 }
 0x603   :  { %v2791_v36 = vpop.eup %2790  ;;  %2305 = vmatprep.mubr.msk.f32.mxu1 %vm47_vm0, %v588_v34 }
 0x604   :  { %v2793_v38 = vpop.eup %2792  ;;  %2306 = vmatmul.mubr.msk.f32.gmra.mrb[4].mxu1 %vm47_vm0, %v589_v35  ;;  %v591_v41 = vmul.f32 %v2791_v36, %v2775_v58 }
 0x605   :  { %v590_v40 = vmul.f32 %v2793_v38, %v2777_v61  ;;  %2611 = vmatpush3.bf16.msra.mxu1 %v3000_v47 }
 0x606   :  { %2612 = vmatprep.subr.bf16.mxu1 %v2907_v31 }
 0x607   :  { %v2795_v42 = vpop.eup %2794  ;;  %2308 = vmatprep.mubr.msk.f32.mxu1 %vm47_vm0, %v590_v40 }
 0x608   :  { %v2797_v44 = vpop.eup %2796  ;;  %2309 = vmatmul.mubr.msk.f32.gmra.mrb[6].mxu1 %vm47_vm0, %v591_v41  ;;  %v593_v48 = vmul.f32 %v2795_v42, %v2779_v3 }
 0x609   :  { %v592_v46 = vmul.f32 %v2797_v44, %v2781_v11  ;;  %2614 = vmatpush3.bf16.msra.mxu1 %v3010_v50 }
 0x60a   :  { %2615 = vmatprep.subr.bf16.mxu1 %v2907_v31 }
 0x60b   :  { %2311 = vmatprep.mubr.msk.f32.mxu1 %vm47_vm0, %v592_v46 }
 0x60c   :  { %2312 = vmatmul.mubr.msk.f32.gmra.mrb[8].mxu1 %vm47_vm0, %v593_v48 }
 0x60d   :  { %2617 = vmatpush3.bf16.msra.mxu1 %v3020_v53  ;;  %2346 = vmatprep.mubr.msk.f32.mxu1 %vm2908_vm1, %v2909_v4 }
 0x60e   :  { %2618 = vmatprep.subr.bf16.mxu1 %v2907_v31 }
 0x611   :  { %2620 = vmatpush3.bf16.msra.mxu1 %v3030_v56 }
 0x612   :  { %2621 = vmatprep.subr.bf16.mxu1 %v2907_v31 }
 0x615   :  { %2623 = vmatpush3.bf16.msra.mxu1 %v3040_v59 }
 0x616   :  { %2624 = vmatprep.subr.bf16.mxu1 %v2907_v31 }
 0x619   :  { %2626 = vmatpush3.bf16.msra.mxu1 %v3053_v63 }
 0x61a   :  { %2627 = vmatprep.subr.bf16.mxu1 %v2907_v31 }
 0x61d   :  { %2629 = vmatpush3.bf16.msra.mxu1 %v3065_v6 }
 0x61e   :  { %2398 = vmatprep.subr.mxu1 %v2975_v28 }
 0x6d3   :  { %v2304_v49 = vpop.f32.mrb[2].mxu1 }
 0x6d4   :  { %v724_v52 = vmul.f32 %v2304_v49, %v3074_v7  ;;  %v684_v55 = vpop.f32.mrb[3].mxu1 }
 0x6d5   :  { %v723_v57 = vmul.f32 %v684_v55, %v3084_v9 }
 0x6d7   :  { %v731_v58 = vadd.f32 %v724_v52, %v723_v57  ;;  %v2307_v61 = vpop.f32.mrb[4].mxu1 }
 0x6d8   :  { %v694_v0 = vpop.f32.mrb[5].mxu1  ;;  %v726_v3 = vmul.f32 %v2307_v61, %v3108_v22 }
 0x6d9   :  { %v725_v62 = vmul.f32 %v694_v0, %v3098_v17 }
 0x6db   :  { %v732_v11 = vadd.f32 %v731_v58, %v725_v62  ;;  %v2310_v12 = vpop.f32.mrb[6].mxu1 }
 0x6dc   :  { %v728_v5 = vmul.f32 %v2310_v12, %v3079_v8  ;;  %v704_v14 = vpop.f32.mrb[7].mxu1 }
 0x6dd   :  { %v733_v15 = vadd.f32 %v732_v11, %v726_v3  ;;  %v727_v16 = vmul.f32 %v704_v14, %v3089_v10 }
 0x6df   :  { %v734_v1 = vrot.slane %v733_v15, 4  ;;  %v740_v19 = vadd.f32 %v728_v5, %v727_v16  ;;  %v2313_v20 = vpop.f32.mrb[8].mxu1 }
 0x6e0   :  { %v714_v21 = vpop.f32.mrb[9].mxu1  ;;  %v730_v27 = vmul.f32 %v2313_v20, %v3113_v23 }
 0x6e1   :  { %v735_v24 = vadd.f32 %v734_v1, %v733_v15  ;;  %v729_v25 = vmul.f32 %v714_v21, %v3103_v18 }
 0x6e3   :  { %v736_v26 = vrot.slane %v735_v24, 2  ;;  %v741_v29 = vadd.f32 %v740_v19, %v729_v25 }
 0x6e5   :  { %v742_v30 = vadd.f32 %v741_v29, %v730_v27  ;;  %v737_v33 = vadd.f32 %v736_v26, %v735_v24 }
 0x6e7   :  { %v743_v34 = vrot.slane %v742_v30, 4  ;;  %v738_v36 = vrot.slane %v737_v33, 1 }
 0x6e9   :  { %v744_v35 = vadd.f32 %v743_v34, %v742_v30  ;;  %v739_v41 = vadd.f32 %v738_v36, %v737_v33 }
 0x6eb   :  { %v745_v38 = vrot.slane %v744_v35, 2  ;;  %v749_v46 = vmul.f32 %v739_v41, %v739_v41 }
 0x6ed   :  { %v746_v40 = vadd.f32 %v745_v38, %v744_v35 }
 0x6ef   :  { %v747_v42 = vrot.slane %v746_v40, 1 }
 0x6f1   :  { %v748_v44 = vadd.f32 %v747_v42, %v746_v40 }
 0x6f3   :  { %v750_v48 = vmul.f32 %v748_v44, %v748_v44 }
 0x6f5   :  { %v753_v49 = vsel %vm219_vm2, %v750_v48, %v749_v46 }
 0x6f6   :  { %2347 = vmatmul.mubr.f32.vlgmr.msra.gmra.mrb[10].mxu1 %v753_v49 }
 0x6f7   :  { %2399 = vmatpush3.msra.mxu1 %v2975_v28 }
 0x6f8   :  { %2662 = vmatprep.subr.bf16.mxu1 %v2907_v31 }
 0x7c9   :  { %v821_v52 = vpop.f32.mrb[10].mxu1 }
 0x7ca   :  { %v825_v55 = vadd.f32 1e-30, %v821_v52  ;;  %v828_v57 = vadd.f32 1.0, %v821_v52  ;;  %v2348_v58 = vpop.f32.mrb[11].mxu1 }
 0x7cc   :  { %2798 = vrsqrt.f32 %v825_v55 }
 0x7cd   :  { %2800 = vrcp.f32 %v828_v57 }
 0x7d6   :  { %v2799_v61 = vpop.eup %2798 }
 0x7d7   :  { %v827_v0 = vmul.f32 %v2799_v61, %v821_v52  ;;  %v2801_v62 = vpop.eup %2800 }
 0x7d9   :  { %v830_v3 = vmul.f32 %v2801_v62, %v827_v0 }
 0x7db   :  { %2352 = vmatmul.mubr.msk.f32.vlgmr.msra.gmra.mrb[14].mxu0 %vm47_vm0, %v830_v3 }
 0x7dc   :  { %2633 = vmatpush3.bf16.msra.mxu0 %v2986_v32 }
 0x7dd   :  { %2635 = vmatprep.subr.bf16.mxu0 %v3000_v47 }
 0x7e0   :  { %2637 = vmatpush3.bf16.msra.mxu0 %v3000_v47 }
 0x7e1   :  { %2639 = vmatprep.subr.bf16.mxu0 %v3010_v50 }
 0x7e4   :  { %2641 = vmatpush3.bf16.msra.mxu0 %v3010_v50 }
 0x7e5   :  { %2643 = vmatprep.subr.bf16.mxu0 %v3020_v53 }
 0x7e8   :  { %2645 = vmatpush3.bf16.msra.mxu0 %v3020_v53 }
 0x7e9   :  { %2647 = vmatprep.subr.bf16.mxu0 %v3030_v56 }
 0x7ec   :  { %2649 = vmatpush3.bf16.msra.mxu0 %v3030_v56 }
 0x7ed   :  { %2651 = vmatprep.subr.bf16.mxu0 %v3040_v59 }
 0x7f0   :  { %2653 = vmatpush3.bf16.msra.mxu0 %v3040_v59 }
 0x7f1   :  { %2655 = vmatprep.subr.bf16.mxu0 %v3053_v63 }
 0x7f4   :  { %2657 = vmatpush3.bf16.msra.mxu0 %v3053_v63 }
 0x7f5   :  { %2659 = vmatprep.subr.bf16.mxu0 %v3065_v6 }
 0x7f8   :  { %2661 = vmatpush3.bf16.msra.mxu0 %v3065_v6 }
 0x7f9   :  { %2447 = vmatprep.subr.mxu0 %v2909_v4 }
 0x8ae   :  { %v900_v11 = vpop.f32.mrb[14].mxu0 }
 0x8af   :  { %v905_v12 = vrot.slane %v900_v11, 1  ;;  %v908_v5 = vmul.f32 %v900_v11, %v739_v41  ;;  %v2353_v14 = vpop.f32.mrb[15].mxu0 }
 0x8b1   :  { %v909_v15 = vmul.f32 %v905_v12, %v748_v44  ;;  %v913_v16 = vrot.slane %v908_v5, %v3139_v13 }
 0x8b3   :  { %v918_v1 = vmul.f32 %v913_v16, %v3084_v9  ;;  %v919_v19 = vmul.f32 %v913_v16, %v3074_v7  ;;  %v917_v20 = vrot.slane %v909_v15, %v3139_v13  ;;  %v920_v21 = vmul.f32 %v913_v16, %v3098_v17 }
 0x8b4   :  { %v921_v24 = vmul.f32 %v913_v16, %v3108_v22 }
 0x8b5   :  { %2386 = vmatprep.mubr.f32.mxu0 %v918_v1  ;;  %v922_v25 = vmul.f32 %v917_v20, %v3089_v10  ;;  %v923_v26 = vmul.f32 %v917_v20, %v3079_v8  ;;  %v924_v27 = vmul.f32 %v917_v20, %v3103_v18  ;;  %v925_v29 = vmul.f32 %v917_v20, %v3113_v23 }
 0x8b6   :  { %2387 = vmatmul.mubr.f32.vlgmr.msra.gmra.mrb[16].mxu0 %v919_v19 }
 0x8b7   :  { %2389 = vmatprep.mubr.f32.mxu0 %v920_v21  ;;  %2448 = vmatpush3.msra.mxu0 %v2975_v28 }
 0x8b8   :  { %2496 = vmatprep.subr.mxu0 %v2975_v28 }
 0x8ba   :  { %2390 = vmatmul.mubr.f32.gmra.mrb[18].mxu0 %v921_v24 }
 0x8bb   :  { %2392 = vmatprep.mubr.f32.mxu0 %v922_v25 }
 0x8be   :  { %2393 = vmatmul.mubr.f32.gmra.mrb[20].mxu0 %v923_v26 }
 0x8bf   :  { %2395 = vmatprep.mubr.f32.mxu0 %v924_v27 }
 0x8c2   :  { %2396 = vmatmul.mubr.f32.gmra.mrb[22].mxu0 %v925_v29 }
 0x8c3   :  { %2449 = vmatprep.mubr.msk.f32.mxu0 %vm2908_vm1, %v2909_v4 }
 0x989   :  { %v2388_v30 = vpop.f32.mrb[16].mxu0 }
 0x98a   :  { %v3280_v33 = vadd.f32 %v2388_v30, %v3156_v37  ;;  %v992_v28 = vpop.f32.mrb[17].mxu0 }
 0x98b   :  { %v3283_v34 = vadd.f32 %v992_v28, %v3159_v39 }
 0x98c   :  { %v1042_v35 = vsel %vm47_vm0, %v3280_v33, -inf }
 0x98d   :  { %1043 = vmax.xlane.f32.xlu1 %v1042_v35  ;;  %v2391_v36 = vpop.f32.mrb[18].mxu0  ;;  %v1039_v38 = vsel %vm47_vm0, %v3283_v34, -inf }
 0x98e   :  { %v3290_v40 = vadd.f32 %v2391_v36, %v3166_v43  ;;  %1040 = vmax.xlane.f32.xlu0 %v1039_v38  ;;  %v1002_v41 = vpop.f32.mrb[19].mxu0 }
 0x98f   :  { %v3293_v37 = vadd.f32 %v1002_v41, %v3169_v45 }
 0x990   :  { %v1048_v39 = vsel %vm47_vm0, %v3290_v40, -inf }
 0x991   :  { %1049 = vmax.xlane.f32.xlu1 %v1048_v39  ;;  %v2394_v42 = vpop.f32.mrb[20].mxu0  ;;  %v1045_v44 = vsel %vm47_vm0, %v3293_v37, -inf }
 0x992   :  { %v3300_v46 = vadd.f32 %v2394_v42, %v3176_v51  ;;  %1046 = vmax.xlane.f32.xlu0 %v1045_v44  ;;  %v1012_v48 = vpop.f32.mrb[21].mxu0 }
 0x993   :  { %v3303_v43 = vadd.f32 %v1012_v48, %v3179_v54 }
 0x994   :  { %v1054_v45 = vsel %vm47_vm0, %v3300_v46, -inf }
 0x995   :  { %1055 = vmax.xlane.f32.xlu1 %v1054_v45  ;;  %v2397_v49 = vpop.f32.mrb[22].mxu0  ;;  %v1051_v52 = vsel %vm47_vm0, %v3303_v43, -inf }
 0x996   :  { %v3310_v55 = vadd.f32 %v2397_v49, %v3186_v60  ;;  %1052 = vmax.xlane.f32.xlu0 %v1051_v52  ;;  %v1022_v57 = vpop.f32.mrb[23].mxu0 }
 0x997   :  { %v3313_v51 = vadd.f32 %v1022_v57, %v3189_v2 }
 0x998   :  { %v1060_v54 = vsel %vm47_vm0, %v3310_v55, -inf }
 0x999   :  { %1061 = vmax.xlane.f32.xlu1 %v1060_v54  ;;  %v1057_v58 = vsel %vm47_vm0, %v3313_v51, -inf }
 0x99a   :  { %1058 = vmax.xlane.f32.xlu0 %v1057_v58 }
 0xa1a   :  { %v1044_v61 = vpop.xlane.xlu1 %1043 }
 0xa1b   :  { %v1064_v0 = vsub.f32 %v3280_v33, %v1044_v61  ;;  %v1041_v62 = vpop.xlane.xlu0 %1040 }
 0xa1c   :  { %v1063_v60 = vsub.f32 %v3283_v34, %v1041_v62 }
 0xa1d   :  { %v1073_v3 = vmul.f32 1.442695, %v1064_v0 }
 0xa1e   :  { %v1071_v11 = vmul.f32 1.442695, %v1063_v60  ;;  %v1050_v12 = vpop.xlane.xlu1 %1049 }
 0xa1f   :  { %2802 = vpow2.f32 %v1073_v3  ;;  %v1066_v2 = vsub.f32 %v3290_v40, %v1050_v12  ;;  %v1047_v5 = vpop.xlane.xlu0 %1046 }
 0xa20   :  { %2804 = vpow2.f32 %v1071_v11  ;;  %v1065_v14 = vsub.f32 %v3293_v37, %v1047_v5 }
 0xa21   :  { %v1077_v15 = vmul.f32 1.442695, %v1066_v2 }
 0xa22   :  { %v1075_v16 = vmul.f32 1.442695, %v1065_v14  ;;  %v1056_v1 = vpop.xlane.xlu1 %1055 }
 0xa23   :  { %2806 = vpow2.f32 %v1077_v15  ;;  %v1068_v19 = vsub.f32 %v3300_v46, %v1056_v1  ;;  %v1053_v20 = vpop.xlane.xlu0 %1052 }
 0xa24   :  { %2808 = vpow2.f32 %v1075_v16  ;;  %v1067_v21 = vsub.f32 %v3303_v43, %v1053_v20 }
 0xa25   :  { %v1081_v24 = vmul.f32 1.442695, %v1068_v19 }
 0xa26   :  { %v1079_v25 = vmul.f32 1.442695, %v1067_v21  ;;  %v1062_v26 = vpop.xlane.xlu1 %1061 }
 0xa27   :  { %2810 = vpow2.f32 %v1081_v24  ;;  %v1070_v27 = vsub.f32 %v3310_v55, %v1062_v26  ;;  %v1059_v29 = vpop.xlane.xlu0 %1058 }
 0xa28   :  { %2812 = vpow2.f32 %v1079_v25  ;;  %v1069_v30 = vsub.f32 %v3313_v51, %v1059_v29 }
 0xa29   :  { %v2803_v28 = vpop.eup %2802  ;;  %v1085_v35 = vmul.f32 1.442695, %v1070_v27 }
 0xa2a   :  { %v2805_v36 = vpop.eup %2804  ;;  %v1083_v38 = vmul.f32 1.442695, %v1069_v30  ;;  %v1090_v41 = vsel %vm47_vm0, %v2803_v28, 0.0 }
 0xa2b   :  { %2814 = vpow2.f32 %v1085_v35  ;;  %1091 = vadd.xlane.f32.xlu1 %v1090_v41  ;;  %v1087_v39 = vsel %vm47_vm0, %v2805_v36, 0.0 }
 0xa2c   :  { %2816 = vpow2.f32 %v1083_v38  ;;  %1088 = vadd.xlane.f32.xlu0 %v1087_v39 }
 0xa2d   :  { %v2807_v42 = vpop.eup %2806 }
 0xa2e   :  { %v2809_v44 = vpop.eup %2808  ;;  %v1096_v48 = vsel %vm47_vm0, %v2807_v42, 0.0 }
 0xa2f   :  { %1097 = vadd.xlane.f32.xlu1 %v1096_v48  ;;  %v1093_v45 = vsel %vm47_vm0, %v2809_v44, 0.0 }
 0xa30   :  { %1094 = vadd.xlane.f32.xlu0 %v1093_v45 }
 0xa31   :  { %v2811_v49 = vpop.eup %2810 }
 0xa32   :  { %v2813_v52 = vpop.eup %2812  ;;  %v1102_v57 = vsel %vm47_vm0, %v2811_v49, 0.0 }
 0xa33   :  { %1103 = vadd.xlane.f32.xlu1 %v1102_v57  ;;  %v1099_v54 = vsel %vm47_vm0, %v2813_v52, 0.0 }
 0xa34   :  { %1100 = vadd.xlane.f32.xlu0 %v1099_v54 }
 0xa35   :  { %v2815_v58 = vpop.eup %2814 }
 0xa36   :  { %v2817_v61 = vpop.eup %2816  ;;  %v1108_v0 = vsel %vm47_vm0, %v2815_v58, 0.0 }
 0xa37   :  { %1109 = vadd.xlane.f32.xlu1 %v1108_v0  ;;  %v1105_v62 = vsel %vm47_vm0, %v2817_v61, 0.0 }
 0xa38   :  { %1106 = vadd.xlane.f32.xlu0 %v1105_v62 }
 0xab8   :  { %v1092_v60 = vpop.xlane.xlu1 %1091 }
 0xab9   :  { %2818 = vrcp.f32 %v1092_v60  ;;  %v1089_v3 = vpop.xlane.xlu0 %1088 }
 0xaba   :  { %2820 = vrcp.f32 %v1089_v3 }
 0xabc   :  { %v1098_v11 = vpop.xlane.xlu1 %1097 }
 0xabd   :  { %2822 = vrcp.f32 %v1098_v11  ;;  %v1095_v12 = vpop.xlane.xlu0 %1094 }
 0xabe   :  { %2824 = vrcp.f32 %v1095_v12 }
 0xac0   :  { %v1104_v2 = vpop.xlane.xlu1 %1103 }
 0xac1   :  { %2826 = vrcp.f32 %v1104_v2  ;;  %v1101_v5 = vpop.xlane.xlu0 %1100 }
 0xac2   :  { %2828 = vrcp.f32 %v1101_v5 }
 0xac3   :  { %v2819_v14 = vpop.eup %2818 }
 0xac4   :  { %v2821_v15 = vpop.eup %2820  ;;  %v1110_v16 = vpop.xlane.xlu1 %1109  ;;  %v1120_v20 = vmul.f32 %v2819_v14, %v2803_v28 }
 0xac5   :  { %2830 = vrcp.f32 %v1110_v16  ;;  %v1107_v1 = vpop.xlane.xlu0 %1106  ;;  %v1119_v19 = vmul.f32 %v2821_v15, %v2805_v36 }
 0xac6   :  { %2832 = vrcp.f32 %v1107_v1 }
 0xac7   :  { %v2823_v21 = vpop.eup %2822  ;;  %2400 = vmatprep.mubr.msk.f32.mxu1 %vm47_vm0, %v1119_v19 }
 0xac8   :  { %v2825_v24 = vpop.eup %2824  ;;  %2401 = vmatmul.mubr.msk.f32.vlgmr.msra.gmra.mrb[12].mxu1 %vm47_vm0, %v1120_v20  ;;  %v1122_v26 = vmul.f32 %v2823_v21, %v2807_v42 }
 0xac9   :  { %v1121_v25 = vmul.f32 %v2825_v24, %v2809_v44  ;;  %2664 = vmatpush3.bf16.msra.mxu1 %v2986_v32 }
 0xaca   :  { %2665 = vmatprep.subr.bf16.mxu1 %v2907_v31 }
 0xacb   :  { %v2827_v27 = vpop.eup %2826  ;;  %2403 = vmatprep.mubr.msk.f32.mxu1 %vm47_vm0, %v1121_v25 }
 0xacc   :  { %v2829_v29 = vpop.eup %2828  ;;  %2404 = vmatmul.mubr.msk.f32.gmra.mrb[14].mxu1 %vm47_vm0, %v1122_v26  ;;  %v1124_v28 = vmul.f32 %v2827_v27, %v2811_v49 }
 0xacd   :  { %v1123_v30 = vmul.f32 %v2829_v29, %v2813_v52  ;;  %2667 = vmatpush3.bf16.msra.mxu1 %v3000_v47 }
 0xace   :  { %2668 = vmatprep.subr.bf16.mxu1 %v2907_v31 }
 0xacf   :  { %v2831_v35 = vpop.eup %2830  ;;  %2406 = vmatprep.mubr.msk.f32.mxu1 %vm47_vm0, %v1123_v30 }
 0xad0   :  { %v2833_v36 = vpop.eup %2832  ;;  %2407 = vmatmul.mubr.msk.f32.gmra.mrb[16].mxu1 %vm47_vm0, %v1124_v28  ;;  %v1126_v41 = vmul.f32 %v2831_v35, %v2815_v58 }
 0xad1   :  { %v1125_v38 = vmul.f32 %v2833_v36, %v2817_v61  ;;  %2670 = vmatpush3.bf16.msra.mxu1 %v3010_v50 }
 0xad2   :  { %2671 = vmatprep.subr.bf16.mxu1 %v2907_v31 }
 0xad3   :  { %2409 = vmatprep.mubr.msk.f32.mxu1 %vm47_vm0, %v1125_v38 }
 0xad4   :  { %2410 = vmatmul.mubr.msk.f32.gmra.mrb[18].mxu1 %vm47_vm0, %v1126_v41 }
 0xad5   :  { %2673 = vmatpush3.bf16.msra.mxu1 %v3020_v53  ;;  %2444 = vmatprep.mubr.msk.f32.mxu1 %vm2908_vm1, %v2909_v4 }
 0xad6   :  { %2674 = vmatprep.subr.bf16.mxu1 %v2907_v31 }
 0xad9   :  { %2676 = vmatpush3.bf16.msra.mxu1 %v3030_v56 }
 0xada   :  { %2677 = vmatprep.subr.bf16.mxu1 %v2907_v31 }
 0xadd   :  { %2679 = vmatpush3.bf16.msra.mxu1 %v3040_v59 }
 0xade   :  { %2680 = vmatprep.subr.bf16.mxu1 %v2907_v31 }
 0xae1   :  { %2682 = vmatpush3.bf16.msra.mxu1 %v3053_v63 }
 0xae2   :  { %2683 = vmatprep.subr.bf16.mxu1 %v2907_v31 }
 0xae5   :  { %2685 = vmatpush3.bf16.msra.mxu1 %v3065_v6 }
 0xae6   :  { %2687 = vmatprep.subr.bf16.mxu1 %v2986_v32 }
 0xb9b   :  { %v2402_v39 = vpop.f32.mrb[12].mxu1 }
 0xb9c   :  { %v1257_v42 = vmul.f32 %v2402_v39, %v3074_v7  ;;  %v1217_v44 = vpop.f32.mrb[13].mxu1  ;;  %v3389_v39 = vld [vmem:[%s3521_s2] sm:$0xff] }
 0xb9d   :  { %v1256_v48 = vmul.f32 %v1217_v44, %v3084_v9 }
 0xb9f   :  { %v1264_v45 = vadd.f32 %v1257_v42, %v1256_v48  ;;  %v2405_v49 = vpop.f32.mrb[14].mxu1 }
 0xba0   :  { %v1227_v52 = vpop.f32.mrb[15].mxu1  ;;  %v1259_v54 = vmul.f32 %v2405_v49, %v3108_v22 }
 0xba1   :  { %v1258_v57 = vmul.f32 %v1227_v52, %v3098_v17 }
 0xba3   :  { %v1265_v58 = vadd.f32 %v1264_v45, %v1258_v57  ;;  %v2408_v61 = vpop.f32.mrb[16].mxu1  ;;  %v3397_v57 = vld [vmem:[%s3522_s3] sm:$0xff] }
 0xba4   :  { %v1261_v0 = vmul.f32 %v2408_v61, %v3079_v8  ;;  %v1237_v62 = vpop.f32.mrb[17].mxu1 }
 0xba5   :  { %v1266_v60 = vadd.f32 %v1265_v58, %v1259_v54  ;;  %v1260_v3 = vmul.f32 %v1237_v62, %v3089_v10  ;;  %v3403_v58 = vld [vmem:[%s3522_s3 + $0x8] sm:$0xff]  ;;  %v3410_v62 = vld [vmem:[%s3522_s3 + $0x10] sm:$0xff] }
 0xba7   :  { %v1267_v11 = vrot.slane %v1266_v60, 4  ;;  %v1273_v7 = vadd.f32 %v1261_v0, %v1260_v3  ;;  %v2411_v12 = vpop.f32.mrb[18].mxu1  ;;  %v3416_v3 = vld [vmem:[%s3522_s3 + $0x18] sm:$0xff] }
 0xba8   :  { %v1247_v2 = vpop.f32.mrb[19].mxu1  ;;  %v1263_v17 = vmul.f32 %v2411_v12, %v3113_v23  ;;  %v3428_v12 = vld [vmem:[%s3522_s3 + $0x28] sm:$0xff] }
 0xba9   :  { %v1268_v9 = vadd.f32 %v1267_v11, %v1266_v60  ;;  %v1262_v5 = vmul.f32 %v1247_v2, %v3103_v18 }
 0xbab   :  { %v1269_v14 = vrot.slane %v1268_v9, 2  ;;  %v1274_v15 = vadd.f32 %v1273_v7, %v1262_v5 }
 0xbad   :  { %v1275_v22 = vadd.f32 %v1274_v15, %v1263_v17  ;;  %v1270_v16 = vadd.f32 %v1269_v14, %v1268_v9  ;;  %v3434_v9 = vld [vmem:[%s3522_s3 + $0x30] sm:$0xff]  ;;  %v3440_v14 = vld [vmem:[%s3522_s3 + $0x38] sm:$0xff] }
 0xbaf   :  { %v1276_v1 = vrot.slane %v1275_v22, 4  ;;  %v1271_v8 = vrot.slane %v1270_v16, 1 }
 0xbb1   :  { %v1277_v19 = vadd.f32 %v1276_v1, %v1275_v22  ;;  %v1272_v24 = vadd.f32 %v1271_v8, %v1270_v16 }
 0xbb3   :  { %v1278_v20 = vrot.slane %v1277_v19, 2  ;;  %v1282_v26 = vmul.f32 %v1272_v24, %v1272_v24 }
 0xbb5   :  { %v1279_v21 = vadd.f32 %v1278_v20, %v1277_v19 }
 0xbb7   :  { %v1280_v10 = vrot.slane %v1279_v21, 1 }
 0xbb9   :  { %v1281_v25 = vadd.f32 %v1280_v10, %v1279_v21 }
 0xbbb   :  { %v1283_v27 = vmul.f32 %v1281_v25, %v1281_v25 }
 0xbbd   :  { %v1286_v29 = vsel %vm219_vm2, %v1283_v27, %v1282_v26 }
 0xbbe   :  { %2445 = vmatmul.mubr.f32.vlgmr.msra.gmra.mrb[20].mxu1 %v1286_v29 }
 0xbbf   :  { %2689 = vmatpush3.bf16.msra.mxu1 %v2986_v32 }
 0xbc0   :  { %2691 = vmatprep.subr.bf16.mxu1 %v3000_v47 }
 0xbc3   :  { %2693 = vmatpush3.bf16.msra.mxu1 %v3000_v47 }
 0xbc4   :  { %2695 = vmatprep.subr.bf16.mxu1 %v3010_v50 }
 0xbc7   :  { %2697 = vmatpush3.bf16.msra.mxu1 %v3010_v50 }
 0xbc8   :  { %2699 = vmatprep.subr.bf16.mxu1 %v3020_v53 }
 0xbcb   :  { %2701 = vmatpush3.bf16.msra.mxu1 %v3020_v53 }
 0xbcc   :  { %2703 = vmatprep.subr.bf16.mxu1 %v3030_v56 }
 0xbcf   :  { %2705 = vmatpush3.bf16.msra.mxu1 %v3030_v56 }
 0xbd0   :  { %2707 = vmatprep.subr.bf16.mxu1 %v3040_v59 }
 0xbd3   :  { %2709 = vmatpush3.bf16.msra.mxu1 %v3040_v59 }
 0xbd4   :  { %2711 = vmatprep.subr.bf16.mxu1 %v3053_v63 }
 0xbd7   :  { %2713 = vmatpush3.bf16.msra.mxu1 %v3053_v63 }
 0xbd8   :  { %2715 = vmatprep.subr.bf16.mxu1 %v3065_v6 }
 0xbdb   :  { %2717 = vmatpush3.bf16.msra.mxu1 %v3065_v6 }
 0xc91   :  { %v1354_v18 = vpop.f32.mrb[20].mxu1 }
 0xc92   :  { %v1358_v23 = vadd.f32 1e-30, %v1354_v18  ;;  %v1361_v30 = vadd.f32 1.0, %v1354_v18  ;;  %v2446_v28 = vpop.f32.mrb[21].mxu1 }
 0xc94   :  { %2834 = vrsqrt.f32 %v1358_v23 }
 0xc95   :  { %2836 = vrcp.f32 %v1361_v30 }
 0xc9e   :  { %v2835_v35 = vpop.eup %2834 }
 0xc9f   :  { %v1360_v36 = vmul.f32 %v2835_v35, %v1354_v18  ;;  %v2837_v38 = vpop.eup %2836 }
 0xca1   :  { %v1363_v41 = vmul.f32 %v2837_v38, %v1360_v36 }
 0xca3   :  { %2450 = vmatmul.mubr.msk.f32.vlgmr.msra.gmra.mrb[24].mxu0 %vm47_vm0, %v1363_v41 }
 0xca4   :  { %2497 = vmatpush3.msra.mxu0 %v3389_v39 }
 0xca5   :  { %2718 = vmatprep.subr.bf16.mxu0 %v2907_v31 }
 0xd76   :  { %v1433_v42 = vpop.f32.mrb[24].mxu0 }
 0xd77   :  { %v1438_v44 = vrot.slane %v1433_v42, 1  ;;  %v1441_v48 = vmul.f32 %v1433_v42, %v1272_v24  ;;  %v2451_v45 = vpop.f32.mrb[25].mxu0 }
 0xd79   :  { %v1442_v49 = vmul.f32 %v1438_v44, %v1281_v25  ;;  %v1446_v52 = vrot.slane %v1441_v48, %v3139_v13 }
 0xd7b   :  { %v1451_v54 = vmul.f32 %v3397_v57, %v1446_v52  ;;  %v1452_v61 = vmul.f32 %v3403_v58, %v1446_v52  ;;  %v1450_v0 = vrot.slane %v1442_v49, %v3139_v13  ;;  %v1453_v60 = vmul.f32 %v3410_v62, %v1446_v52  ;;  %v3422_v13 = vld [vmem:[%s3522_s3 + $0x20] sm:$0xff]  ;;  %s2910_s3 = smov [#allocation2]  }
 0xd7c   :  { %v1454_v11 = vmul.f32 %v3416_v3, %v1446_v52  ;;  %s1988_s7 = sshll.u32 %s2910_s3, 4  ;;  %s1989_s7 = int_to_ptr.vmem [resolvable:$true] %s1988_s7 }
 0xd7d   :  { %2484 = vmatprep.mubr.f32.mxu1 %v1451_v54  ;;  %v1455_v7 = vmul.f32 %v3422_v13, %v1450_v0  ;;  %v1456_v2 = vmul.f32 %v3428_v12, %v1450_v0  ;;  %v1457_v5 = vmul.f32 %v3434_v9, %v1450_v0  ;;  %v1458_v17 = vmul.f32 %v3440_v14, %v1450_v0  ;;  %s2883_s8 = scalar_lea.vmem %s1989_s7, 32  ;;  %p2888_p1 = scmp.lt.s32.totalorder %s1989_s7, %s1989_s7 }
 0xd7e   :  { %2485 = vmatmul.mubr.f32.vlgmr.msra.gmra.mrb[22].mxu1 %v1452_v61  ;;  %p2884_p0 = scmp.ne.s32.totalorder %s1989_s7, %s2883_s8  ;;  %p2889_p2 = scmp.lt.s32.totalorder %s2883_s8, %s2883_s8 }
 0xd7f   :  { %2487 = vmatprep.mubr.f32.mxu1 %v1453_v60 }
 0xd80   :  { %p2890_p3 = por %p2889_p2, %p2888_p1 }
 0xd82   :  { %2488 = vmatmul.mubr.f32.gmra.mrb[24].mxu1 %v1454_v11  ;;  %p2891_p4 = pnand %p2890_p3, %p2884_p0 }
 0xd83   :  { %2490 = vmatprep.mubr.f32.mxu1 %v1455_v7 }
 0xd86   :  { %2491 = vmatmul.mubr.f32.gmra.mrb[26].mxu1 %v1456_v2 }
 0xd87   :  { %2493 = vmatprep.mubr.f32.mxu1 %v1457_v5 }
 0xd8a   :  { %2494 = vmatmul.mubr.f32.gmra.mrb[28].mxu1 %v1458_v17 }
 0xe51   :  { %v2486_v15 = vpop.f32.mrb[22].mxu1 }
 0xe52   :  { %v1565_v22 = vadd.f32 %v2486_v15, %v3280_v33  ;;  %v1525_v16 = vpop.f32.mrb[23].mxu1 }
 0xe53   :  { %v1564_v1 = vadd.f32 %v1525_v16, %v3283_v34 }
 0xe54   :  { %v1575_v19 = vsel %vm47_vm0, %v1565_v22, -inf }
 0xe55   :  { %1576 = vmax.xlane.f32.xlu1 %v1575_v19  ;;  %v2489_v8 = vpop.f32.mrb[24].mxu1  ;;  %v1572_v20 = vsel %vm47_vm0, %v1564_v1, -inf }
 0xe56   :  { %v1567_v21 = vadd.f32 %v2489_v8, %v3290_v40  ;;  %1573 = vmax.xlane.f32.xlu0 %v1572_v20  ;;  %v1535_v24 = vpop.f32.mrb[25].mxu1 }
 0xe57   :  { %v1566_v10 = vadd.f32 %v1535_v24, %v3293_v37 }
 0xe58   :  { %v1581_v25 = vsel %vm47_vm0, %v1567_v21, -inf }
 0xe59   :  { %1582 = vmax.xlane.f32.xlu1 %v1581_v25  ;;  %v2492_v26 = vpop.f32.mrb[26].mxu1  ;;  %v1578_v33 = vsel %vm47_vm0, %v1566_v10, -inf }
 0xe5a   :  { %v1569_v34 = vadd.f32 %v2492_v26, %v3300_v46  ;;  %1579 = vmax.xlane.f32.xlu0 %v1578_v33  ;;  %v1545_v27 = vpop.f32.mrb[27].mxu1 }
 0xe5b   :  { %v1568_v29 = vadd.f32 %v1545_v27, %v3303_v43 }
 0xe5c   :  { %v1587_v18 = vsel %vm47_vm0, %v1569_v34, -inf }
 0xe5d   :  { %1588 = vmax.xlane.f32.xlu1 %v1587_v18  ;;  %v2495_v40 = vpop.f32.mrb[28].mxu1  ;;  %v1584_v23 = vsel %vm47_vm0, %v1568_v29, -inf }
 0xe5e   :  { %v1571_v37 = vadd.f32 %v2495_v40, %v3310_v55  ;;  %1585 = vmax.xlane.f32.xlu0 %v1584_v23  ;;  %v1555_v30 = vpop.f32.mrb[29].mxu1 }
 0xe5f   :  { %v1570_v28 = vadd.f32 %v1555_v30, %v3313_v51 }
 0xe60   :  { %v1593_v35 = vsel %vm47_vm0, %v1571_v37, -inf }
 0xe61   :  { %1594 = vmax.xlane.f32.xlu1 %v1593_v35  ;;  %v1590_v46 = vsel %vm47_vm0, %v1570_v28, -inf }
 0xe62   :  { %1591 = vmax.xlane.f32.xlu0 %v1590_v46 }
 0xee2   :  { %v1577_v36 = vpop.xlane.xlu1 %1576 }
 0xee3   :  { %v1597_v43 = vsub.f32 %v1565_v22, %v1577_v36  ;;  %v1574_v38 = vpop.xlane.xlu0 %1573 }
 0xee4   :  { %v1596_v41 = vsub.f32 %v1564_v1, %v1574_v38 }
 0xee5   :  { %v1606_v42 = vmul.f32 1.442695, %v1597_v43 }
 0xee6   :  { %v1604_v44 = vmul.f32 1.442695, %v1596_v41  ;;  %v1583_v48 = vpop.xlane.xlu1 %1582 }
 0xee7   :  { %2838 = vpow2.f32 %v1606_v42  ;;  %v1599_v45 = vsub.f32 %v1567_v21, %v1583_v48  ;;  %v1580_v55 = vpop.xlane.xlu0 %1579 }
 0xee8   :  { %2840 = vpow2.f32 %v1604_v44  ;;  %v1598_v49 = vsub.f32 %v1566_v10, %v1580_v55 }
 0xee9   :  { %v1610_v52 = vmul.f32 1.442695, %v1599_v45 }
 0xeea   :  { %v1608_v51 = vmul.f32 1.442695, %v1598_v49  ;;  %v1589_v54 = vpop.xlane.xlu1 %1588 }
 0xeeb   :  { %2842 = vpow2.f32 %v1610_v52  ;;  %v1601_v61 = vsub.f32 %v1569_v34, %v1589_v54  ;;  %v1586_v0 = vpop.xlane.xlu0 %1585 }
 0xeec   :  { %2844 = vpow2.f32 %v1608_v51  ;;  %v1600_v60 = vsub.f32 %v1568_v29, %v1586_v0 }
 0xeed   :  { %v1614_v11 = vmul.f32 1.442695, %v1601_v61 }
 0xeee   :  { %v1612_v7 = vmul.f32 1.442695, %v1600_v60  ;;  %v1595_v2 = vpop.xlane.xlu1 %1594 }
 0xeef   :  { %2846 = vpow2.f32 %v1614_v11  ;;  %v1603_v5 = vsub.f32 %v1571_v37, %v1595_v2  ;;  %v1592_v17 = vpop.xlane.xlu0 %1591 }
 0xef0   :  { %2848 = vpow2.f32 %v1612_v7  ;;  %v1602_v15 = vsub.f32 %v1570_v28, %v1592_v17 }
 0xef1   :  { %v2839_v22 = vpop.eup %2838  ;;  %v1618_v16 = vmul.f32 1.442695, %v1603_v5 }
 0xef2   :  { %v2841_v1 = vpop.eup %2840  ;;  %v1616_v19 = vmul.f32 1.442695, %v1602_v15  ;;  %v1623_v8 = vsel %vm47_vm0, %v2839_v22, 0.0 }
 0xef3   :  { %2850 = vpow2.f32 %v1618_v16  ;;  %1624 = vadd.xlane.f32.xlu1 %v1623_v8  ;;  %v1620_v20 = vsel %vm47_vm0, %v2841_v1, 0.0 }
 0xef4   :  { %2852 = vpow2.f32 %v1616_v19  ;;  %1621 = vadd.xlane.f32.xlu0 %v1620_v20 }
 0xef5   :  { %v2843_v21 = vpop.eup %2842 }
 0xef6   :  { %v2845_v24 = vpop.eup %2844  ;;  %v1629_v10 = vsel %vm47_vm0, %v2843_v21, 0.0 }
 0xef7   :  { %1630 = vadd.xlane.f32.xlu1 %v1629_v10  ;;  %v1626_v25 = vsel %vm47_vm0, %v2845_v24, 0.0 }
 0xef8   :  { %1627 = vadd.xlane.f32.xlu0 %v1626_v25 }
 0xef9   :  { %v2847_v26 = vpop.eup %2846 }
 0xefa   :  { %v2849_v33 = vpop.eup %2848  ;;  %v1635_v34 = vsel %vm47_vm0, %v2847_v26, 0.0 }
 0xefb   :  { %1636 = vadd.xlane.f32.xlu1 %v1635_v34  ;;  %v1632_v27 = vsel %vm47_vm0, %v2849_v33, 0.0 }
 0xefc   :  { %1633 = vadd.xlane.f32.xlu0 %v1632_v27 }
 0xefd   :  { %v2851_v29 = vpop.eup %2850 }
 0xefe   :  { %v2853_v18 = vpop.eup %2852  ;;  %v1641_v40 = vsel %vm47_vm0, %v2851_v29, 0.0 }
 0xeff   :  { %1642 = vadd.xlane.f32.xlu1 %v1641_v40  ;;  %v1638_v23 = vsel %vm47_vm0, %v2853_v18, 0.0 }
 0xf00   :  { %1639 = vadd.xlane.f32.xlu0 %v1638_v23 }
 0xf80   :  { %v1625_v37 = vpop.xlane.xlu1 %1624 }
 0xf81   :  { %2854 = vrcp.f32 %v1625_v37  ;;  %v1622_v30 = vpop.xlane.xlu0 %1621 }
 0xf82   :  { %2856 = vrcp.f32 %v1622_v30 }
 0xf84   :  { %v1631_v28 = vpop.xlane.xlu1 %1630 }
 0xf85   :  { %2858 = vrcp.f32 %v1631_v28  ;;  %v1628_v35 = vpop.xlane.xlu0 %1627 }
 0xf86   :  { %2860 = vrcp.f32 %v1628_v35 }
 0xf88   :  { %v1637_v46 = vpop.xlane.xlu1 %1636 }
 0xf89   :  { %2862 = vrcp.f32 %v1637_v46  ;;  %v1634_v36 = vpop.xlane.xlu0 %1633 }
 0xf8a   :  { %2864 = vrcp.f32 %v1634_v36 }
 0xf8b   :  { %v2855_v43 = vpop.eup %2854 }
 0xf8c   :  { %v2857_v38 = vpop.eup %2856  ;;  %v1643_v41 = vpop.xlane.xlu1 %1642  ;;  %v1653_v48 = vmul.f32 %v2855_v43, %v2839_v22 }
 0xf8d   :  { %2866 = vrcp.f32 %v1643_v41  ;;  %v1640_v42 = vpop.xlane.xlu0 %1639  ;;  %v1652_v44 = vmul.f32 %v2857_v38, %v2841_v1 }
 0xf8e   :  { %2868 = vrcp.f32 %v1640_v42 }
 0xf8f   :  { %v2859_v45 = vpop.eup %2858  ;;  %2498 = vmatprep.mubr.msk.f32.mxu0 %vm47_vm0, %v1652_v44 }
 0xf90   :  { %v2861_v55 = vpop.eup %2860  ;;  %2499 = vmatmul.mubr.msk.f32.vlgmr.msra.gmra.mrb[26].mxu0 %vm47_vm0, %v1653_v48  ;;  %v1655_v52 = vmul.f32 %v2859_v45, %v2843_v21 }
 0xf91   :  { %v1654_v49 = vmul.f32 %v2861_v55, %v2845_v24  ;;  %2720 = vmatpush3.bf16.msra.mxu0 %v2986_v32 }
 0xf92   :  { %2721 = vmatprep.subr.bf16.mxu0 %v2907_v31 }
 0xf93   :  { %v2863_v51 = vpop.eup %2862  ;;  %2501 = vmatprep.mubr.msk.f32.mxu0 %vm47_vm0, %v1654_v49 }
 0xf94   :  { %v2865_v54 = vpop.eup %2864  ;;  %2502 = vmatmul.mubr.msk.f32.gmra.mrb[28].mxu0 %vm47_vm0, %v1655_v52  ;;  %v1657_v0 = vmul.f32 %v2863_v51, %v2847_v26 }
 0xf95   :  { %v1656_v61 = vmul.f32 %v2865_v54, %v2849_v33  ;;  %2723 = vmatpush3.bf16.msra.mxu0 %v3000_v47 }
 0xf96   :  { %2724 = vmatprep.subr.bf16.mxu0 %v2907_v31 }
 0xf97   :  { %v2867_v60 = vpop.eup %2866  ;;  %2504 = vmatprep.mubr.msk.f32.mxu0 %vm47_vm0, %v1656_v61 }
 0xf98   :  { %v2869_v11 = vpop.eup %2868  ;;  %2505 = vmatmul.mubr.msk.f32.gmra.mrb[30].mxu0 %vm47_vm0, %v1657_v0  ;;  %v1659_v7 = vmul.f32 %v2867_v60, %v2851_v29 }
 0xf99   :  { %v1658_v32 = vmul.f32 %v2869_v11, %v2853_v18  ;;  %2726 = vmatpush3.bf16.msra.mxu0 %v3010_v50 }
 0xf9a   :  { %2727 = vmatprep.subr.bf16.mxu0 %v2907_v31 }
 0xf9b   :  { %2507 = vmatprep.mubr.msk.f32.mxu0 %vm47_vm0, %v1658_v32 }
 0xf9c   :  { %2508 = vmatmul.mubr.msk.f32.gmra.mrb[32].mxu0 %vm47_vm0, %v1659_v7 }
 0xf9d   :  { %2729 = vmatpush3.bf16.msra.mxu0 %v3020_v53  ;;  %2542 = vmatprep.mubr.msk.f32.mxu0 %vm2908_vm1, %v2909_v4 }
 0xf9e   :  { %2730 = vmatprep.subr.bf16.mxu0 %v2907_v31 }
 0xfa1   :  { %2732 = vmatpush3.bf16.msra.mxu0 %v3030_v56 }
 0xfa2   :  { %2733 = vmatprep.subr.bf16.mxu0 %v2907_v31 }
 0xfa5   :  { %2735 = vmatpush3.bf16.msra.mxu0 %v3040_v59 }
 0xfa6   :  { %2736 = vmatprep.subr.bf16.mxu0 %v2907_v31 }
 0xfa9   :  { %2738 = vmatpush3.bf16.msra.mxu0 %v3053_v63 }
 0xfaa   :  { %2739 = vmatprep.subr.bf16.mxu0 %v2907_v31 }
 0xfad   :  { %2741 = vmatpush3.bf16.msra.mxu0 %v3065_v6 }
 0xfae   :  { %2545 = vmatprep.subr.mxu0 %v2909_v4 }
0x1063   :  { %v2500_v47 = vpop.f32.mrb[26].mxu0 }
0x1064   :  { %v1790_v50 = vmul.f32 %v3403_v58, %v2500_v47  ;;  %v1750_v53 = vpop.f32.mrb[27].mxu0 }
0x1065   :  { %v1789_v56 = vmul.f32 %v3397_v57, %v1750_v53 }
0x1067   :  { %v1797_v2 = vadd.f32 %v1790_v50, %v1789_v56  ;;  %v2503_v5 = vpop.f32.mrb[28].mxu0 }
0x1068   :  { %v1760_v17 = vpop.f32.mrb[29].mxu0  ;;  %v1792_v15 = vmul.f32 %v3416_v3, %v2503_v5 }
0x1069   :  { %v1791_v59 = vmul.f32 %v3410_v62, %v1760_v17 }
0x106b   :  { %v1798_v63 = vadd.f32 %v1797_v2, %v1791_v59  ;;  %v2506_v22 = vpop.f32.mrb[30].mxu0 }
0x106c   :  { %v1794_v31 = vmul.f32 %v3428_v12, %v2506_v22  ;;  %v1770_v6 = vpop.f32.mrb[31].mxu0 }
0x106d   :  { %v1799_v16 = vadd.f32 %v1798_v63, %v1792_v15  ;;  %v1793_v1 = vmul.f32 %v3422_v13, %v1770_v6 }
0x106f   :  { %v1800_v19 = vrot.slane %v1799_v16, 4  ;;  %v1806_v58 = vadd.f32 %v1794_v31, %v1793_v1  ;;  %v2509_v8 = vpop.f32.mrb[32].mxu0 }
0x1070   :  { %v1780_v20 = vpop.f32.mrb[33].mxu0  ;;  %v1796_v62 = vmul.f32 %v3440_v14, %v2509_v8 }
0x1071   :  { %v1801_v57 = vadd.f32 %v1800_v19, %v1799_v16  ;;  %v1795_v21 = vmul.f32 %v3434_v9, %v1780_v20 }
0x1073   :  { %v1802_v24 = vrot.slane %v1801_v57, 2  ;;  %v1807_v10 = vadd.f32 %v1806_v58, %v1795_v21 }
0x1075   :  { %v1808_v3 = vadd.f32 %v1807_v10, %v1796_v62  ;;  %v1803_v25 = vadd.f32 %v1802_v24, %v1801_v57 }
0x1077   :  { %v1809_v26 = vrot.slane %v1808_v3, 4  ;;  %v1804_v12 = vrot.slane %v1803_v25, 1 }
0x1079   :  { %v1810_v33 = vadd.f32 %v1809_v26, %v1808_v3  ;;  %v1805_v29 = vadd.f32 %v1804_v12, %v1803_v25 }
0x107b   :  { %v1811_v34 = vrot.slane %v1810_v33, 2  ;;  %v1815_v40 = vmul.f32 %v1805_v29, %v1805_v29 }
0x107d   :  { %v1812_v27 = vadd.f32 %v1811_v34, %v1810_v33 }
0x107f   :  { %v1813_v13 = vrot.slane %v1812_v27, 1 }
0x1081   :  { %v1814_v18 = vadd.f32 %v1813_v13, %v1812_v27 }
0x1083   :  { %v1816_v23 = vmul.f32 %v1814_v18, %v1814_v18 }
0x1085   :  { %v1819_v37 = vsel %vm219_vm2, %v1816_v23, %v1815_v40 }
0x1086   :  { %2543 = vmatmul.mubr.f32.vlgmr.msra.gmra.mrb[34].mxu0 %v1819_v37 }
0x1087   :  { %2546 = vmatpush3.msra.mxu0 %v3389_v39  ;;  %2547 = vmatprep.mubr.msk.f32.mxu0 %vm2908_vm1, %v2909_v4 }
0x1159   :  { %v1887_v9 = vpop.f32.mrb[34].mxu0 }
0x115a   :  { %v1891_v14 = vadd.f32 1e-30, %v1887_v9  ;;  %v1894_v30 = vadd.f32 1.0, %v1887_v9  ;;  %v2544_v28 = vpop.f32.mrb[35].mxu0 }
0x115c   :  { %2870 = vrsqrt.f32 %v1891_v14 }
0x115d   :  { %2872 = vrcp.f32 %v1894_v30 }
0x1166   :  { %v2871_v35 = vpop.eup %2870 }
0x1167   :  { %v1893_v46 = vmul.f32 %v2871_v35, %v1887_v9  ;;  %v2873_v36 = vpop.eup %2872 }
0x1169   :  { %v1896_v43 = vmul.f32 %v2873_v36, %v1893_v46 }
0x116b   :  { %2548 = vmatmul.mubr.msk.f32.vlgmr.msra.gmra.mrb[36].mxu0 %vm47_vm0, %v1896_v43 }
0x123e   :  { %v1966_v38 = vpop.f32.mrb[36].mxu0 }
0x123f   :  { %v1971_v41 = vrot.slane %v1966_v38, 1  ;;  %v2549_v42 = vpop.f32.mrb[37].mxu0  ;;  %v1974_v39 = vmul.f32 %v1966_v38, %v1805_v29 }
0x1241   :  { %v1975_v44 = vmul.f32 %v1971_v41, %v1814_v18 }
0x1243   :  { %v1978_v4 = vrot.slane %v1975_v44, 7 }
0x1245   :  { %v1979_v48 = vsel %vm219_vm2, %v1978_v4, %v1974_v39 }
0x1246   :  { %1981 = vst [vmem:[#allocation2] sm:$0x3] %v1979_v48 }
0x1247   :  { %2894 = shalt.err (!%p2891_p4)
}
0x1248   :  { %s2895_s11 = scalar_lea.hbm %s3523_s4, 32 }
0x1249   :  { %p2896_p5 = scmp.ne.s32.totalorder %s3523_s4, %s2895_s11  ;;  %p2899_p6 = scmp.lt.u32.totalorder %s2895_s11, %s3523_s4 }
0x124b   :  { %p2901_p7 = pnand %p2899_p6, %p2896_p5 }
0x124d   :  { %2904 = shalt.err (!%p2901_p7)
}
0x124e   :  { %1991 = dma.vmem_to_hbm [thread:$0]  %s1989_s7, 32, %s3523_s4, [#allocation3]  }
0x124f   :  { %2905 = dma.done.wait [#allocation3], 32  }
0x1250   :  { %2906 = vsyncadd [#allocation3], 4294967264 }
0x1251   :  { %1995 = vsyncpa [#allocation3], 1 }

</bundles_post_ra>
